<compile_context>
chip_gen: v7x
topology: tpu7x:2x2x1
jax: 0.10.0
libtpu: 0.0.40
codegen_flags: <defaults>
</compile_context>

<pallas_src>
import functools
import math

import jax
import jax.numpy as jnp
from jax.experimental import pallas as pl
from jax.experimental.pallas import tpu as pltpu

H1 = 512
H2 = 1024
LEAK = 0.2


def _leaky_relu(x):
    return jnp.where(x > 0, x, LEAK * x)


def _round_up(x, n):
    return ((x + n - 1) // n) * n


def _generator_kernel(x_ref, w1_ref, b1_ref, w2q_ref, s2_ref, b2_ref,
                      w3q_ref, s3_ref, b3_ref, o_ref):
    # Layer 1: [eta|z] @ W1 + b1, LeakyReLU (f32 on VPU), bf16 live value.
    x = x_ref[...].astype(jnp.bfloat16)
    h1 = jnp.dot(x, w1_ref[...], preferred_element_type=jnp.float32) + b1_ref[...]
    h1 = _leaky_relu(h1).astype(jnp.bfloat16)

    # Layer 2: int8 weights; per-output-channel scale folded after the dot.
    w2 = w2q_ref[...].astype(jnp.float32).astype(jnp.bfloat16)
    h2 = jnp.dot(h1, w2, preferred_element_type=jnp.float32)
    h2 = h2 * s2_ref[...] + b2_ref[...]
    h2 = _leaky_relu(h2).astype(jnp.bfloat16)

    # Layer 3 (output columns padded to a multiple of 128 -> lane-dense store).
    w3 = w3q_ref[...].astype(jnp.float32).astype(jnp.bfloat16)
    h3 = jnp.dot(h2, w3, preferred_element_type=jnp.float32)
    h3 = h3 * s3_ref[...] + b3_ref[...]
    o_ref[...] = jnp.tanh(h3)                      # f32 on EUP


def _quantize_int8(w):
    """Symmetric per-output-channel int8 quantisation of an (in, out) weight."""
    amax = jnp.max(jnp.abs(w), axis=0, keepdims=True)
    scale = jnp.where(amax > 0, amax / 127.0, 1.0)
    q = jnp.round(w / scale).astype(jnp.int8)
    return q, scale.astype(jnp.float32)


def prepare_params(params):
    """One-time weight preparation, OUTSIDE the per-call jitted path:
    bf16 w1, int8 w2/w3 with per-channel scales, last-layer pad to 128 lanes."""
    w1, b1, w2, b2, w3, b3 = params
    q = w3.shape[1]
    q_pad = _round_up(q, 128)
    w3p = jnp.zeros((w3.shape[0], q_pad), w3.dtype).at[:, :q].set(w3)
    b3p = jnp.zeros((1, q_pad), jnp.float32).at[:, :q].set(b3.reshape(1, -1))
    w2q, s2 = _quantize_int8(w2)
    w3q, s3 = _quantize_int8(w3p)
    return dict(
        w1=w1.astype(jnp.bfloat16),
        b1=b1.reshape(1, -1).astype(jnp.float32),
        w2q=w2q, s2=s2, b2=b2.reshape(1, -1).astype(jnp.float32),
        w3q=w3q, s3=s3, b3=b3p,
    )


@functools.partial(jax.jit, static_argnames=("out_hw",))
def generator_forward(eta, z, prep, out_hw=(14, 28)):
    """eta: (B, m), z: (B, r), prep: prepare_params(params).
    Returns (B, 1, out_hw[0], out_hw[1]) float32 (module semantics)."""
    B, m = eta.shape
    r = z.shape[1]
    K = m + r
    q = out_hw[0] * out_hw[1]
    q_pad = prep["w3q"].shape[1]
    # Explicit check that the prepared weights match the requested output size.
    assert q_pad == _round_up(q, 128), (q, q_pad)

    # Wrapper-side concat of a (B, m+r) array is negligible vs the weight DMA.
    x = jnp.concatenate([eta, z], axis=-1).astype(jnp.float32)

    # Batch tiling: round up to the 8-row f32 sublane; for moderate B split
    # into >=2 grid steps so "parallel" can shard across v7x's 2 TensorCores.
    if B < 32:
        tm = _round_up(B, 8)
    elif B <= 512:
        tm = min(256, _round_up((B + 1) // 2, 8))
    else:
        tm = 256
    Bp = _round_up(B, tm)
    if Bp != B:
        x = jnp.pad(x, ((0, Bp - B), (0, 0)))

    grid = (Bp // tm,)
    row_spec = lambda feat: pl.BlockSpec((tm, feat), lambda i: (i, 0))
    # Constant index_map -> weight block is not re-fetched across grid steps.
    res_spec = lambda shape: pl.BlockSpec(shape, lambda i: (0, 0))

    w_bytes = (prep["w1"].size * 2 + prep["w2q"].size + prep["w3q"].size
               + (prep["b1"].size + prep["s2"].size + prep["b2"].size
                  + prep["s3"].size + prep["b3"].size) * 4)
    cost = pl.CostEstimate(
        flops=2 * Bp * (K * H1 + H1 * H2 + H2 * q_pad),
        transcendentals=Bp * q_pad,
        bytes_accessed=w_bytes + (Bp * K + Bp * q_pad) * 4,
    )

    out_pad = pl.pallas_call(
        _generator_kernel,
        out_shape=jax.ShapeDtypeStruct((Bp, q_pad), jnp.float32),
        grid_spec=pltpu.PrefetchScalarGridSpec(
            num_scalar_prefetch=0,
            grid=grid,
            in_specs=[
                row_spec(K),              # x = [eta | z] tile
                res_spec((K, H1)),        # w1  (bf16, resident)
                res_spec((1, H1)),        # b1  (f32)
                res_spec((H1, H2)),       # w2  (int8, resident)
                res_spec((1, H2)),        # s2  (f32 per-channel scale)
                res_spec((1, H2)),        # b2  (f32)
                res_spec((H2, q_pad)),    # w3 padded (int8, resident)
                res_spec((1, q_pad)),     # s3  (f32 per-channel scale)
                res_spec((1, q_pad)),     # b3 padded (f32)
            ],
            out_specs=row_spec(q_pad),
        ),
        compiler_params=pltpu.CompilerParams(
            dimension_semantics=("parallel",)),
        cost_estimate=cost,
    )(x, prep["w1"], prep["b1"], prep["w2q"], prep["s2"], prep["b2"],
      prep["w3q"], prep["s3"], prep["b3"])

    out = out_pad[:B, :q]
    # PyTorch: generative_result.view(B, 1, 14, 28)
    return out.reshape(B, 1, *out_hw)


def init_params(key, m, r, q):
    """Xavier-uniform weights stored transposed as (in, out), zero biases —
    matching nn.init.xavier_uniform_ / constant_(bias, 0)."""
    dims = [(m + r, H1), (H1, H2), (H2, q)]
    params = []
    for fan_in, fan_out in dims:
        key, sub = jax.random.split(key)
        bound = math.sqrt(6.0 / (fan_in + fan_out))
        w = jax.random.uniform(sub, (fan_in, fan_out), jnp.float32, -bound, bound)
        params.extend([w, jnp.zeros((1, fan_out), jnp.float32)])
    return tuple(params)


if __name__ == "__main__":
    # q must be 14*28 = 392 for the final view.
    B, m, r, q = 2, 16, 16, 14 * 28

    key = jax.random.PRNGKey(0)
    k_eta, k_z, k_p = jax.random.split(key, 3)
    eta = jax.random.normal(k_eta, (B, m), jnp.float32)
    z = jax.random.normal(k_z, (B, r), jnp.float32)
    params = init_params(k_p, m, r, q)

    prep = prepare_params(params)      # one-time, outside the per-call path
    out = generator_forward(eta, z, prep)
    jax.block_until_ready(out)

    assert out.shape == (B, 1, 14, 28), out.shape
    assert out.dtype == jnp.float32

    x = jnp.concatenate([eta, z], axis=-1)

    # Reference 1: same arithmetic as the kernel (bf16 activations, int8
    # per-channel dequantised weights, f32 accumulation) — tight tolerance.
    def bdot(a, w):
        return jnp.dot(a.astype(jnp.bfloat16), w.astype(jnp.bfloat16),
                       preferred_element_type=jnp.float32)

    h = bdot(x, prep["w1"]) + prep["b1"]
    h = jnp.where(h > 0, h, LEAK * h)
    h = bdot(h, prep["w2q"].astype(jnp.float32)) * prep["s2"] + prep["b2"]
    h = jnp.where(h > 0, h, LEAK * h)
    h = bdot(h, prep["w3q"].astype(jnp.float32)) * prep["s3"] + prep["b3"]
    ref_mixed = jnp.tanh(h)[:, :q].reshape(B, 1, 14, 28)
    err_mixed = float(jnp.max(jnp.abs(out - ref_mixed)))
    assert err_mixed < 5e-3, err_mixed

    # Reference 2: full-f32 module semantics — loose tolerance
    # (bf16 activations + int8 per-channel weights).
    w1, b1, w2, b2, w3, b3 = params
    h = x @ w1 + b1
    h = jnp.where(h > 0, h, LEAK * h)
    h = h @ w2 + b2
    h = jnp.where(h > 0, h, LEAK * h)
    ref_f32 = jnp.tanh(h @ w3 + b3).reshape(B, 1, 14, 28)
    err_f32 = float(jnp.max(jnp.abs(out - ref_f32)))
    assert err_f32 < 1e-1, err_f32

    print("KERNEL_OK")
</pallas_src>

<mosaic_0001>
module attributes {stable_mosaic.version = 11 : i64} {
  func.func @_generator_kernel(%arg0: i32, %arg1: memref<8x32xf32, #tpu.memory_space<vmem>>, %arg2: memref<32x512xbf16, #tpu.memory_space<vmem>>, %arg3: memref<1x512xf32, #tpu.memory_space<vmem>>, %arg4: memref<512x1024xi8, #tpu.memory_space<vmem>>, %arg5: memref<1x1024xf32, #tpu.memory_space<vmem>>, %arg6: memref<1x1024xf32, #tpu.memory_space<vmem>>, %arg7: memref<1024x512xi8, #tpu.memory_space<vmem>>, %arg8: memref<1x512xf32, #tpu.memory_space<vmem>>, %arg9: memref<1x512xf32, #tpu.memory_space<vmem>>, %arg10: memref<8x512xf32, #tpu.memory_space<vmem>>) attributes {dimension_semantics = [#tpu.dimension_semantics<parallel>], iteration_bounds = array<i64: 1>, scalar_prefetch = 0 : i64, scratch_operands = 0 : i64, tpu.core_type = #tpu.core_type<tc>, window_params = [{transform_indices = @transform_0, window_bounds = array<i64: 8, 32>}, {pipeline_mode = #tpu.pipeline_mode<synchronous>, transform_indices = @transform_1, window_bounds = array<i64: 32, 512>}, {pipeline_mode = #tpu.pipeline_mode<synchronous>, transform_indices = @transform_2, window_bounds = array<i64: 1, 512>}, {pipeline_mode = #tpu.pipeline_mode<synchronous>, transform_indices = @transform_3, window_bounds = array<i64: 512, 1024>}, {pipeline_mode = #tpu.pipeline_mode<synchronous>, transform_indices = @transform_4, window_bounds = array<i64: 1, 1024>}, {pipeline_mode = #tpu.pipeline_mode<synchronous>, transform_indices = @transform_5, window_bounds = array<i64: 1, 1024>}, {pipeline_mode = #tpu.pipeline_mode<synchronous>, transform_indices = @transform_6, window_bounds = array<i64: 1024, 512>}, {pipeline_mode = #tpu.pipeline_mode<synchronous>, transform_indices = @transform_7, window_bounds = array<i64: 1, 512>}, {pipeline_mode = #tpu.pipeline_mode<synchronous>, transform_indices = @transform_8, window_bounds = array<i64: 1, 512>}, {transform_indices = @transform_9, window_bounds = array<i64: 8, 512>}]} {
    %c0 = arith.constant 0 : index
    %c0_0 = arith.constant 0 : index
    %0 = vector.load %arg1[%c0, %c0_0] : memref<8x32xf32, #tpu.memory_space<vmem>>, vector<8x32xf32>
    %1 = arith.truncf %0 : vector<8x32xf32> to vector<8x32xbf16>
    %c0_1 = arith.constant 0 : index
    %c0_2 = arith.constant 0 : index
    %2 = vector.load %arg2[%c0_1, %c0_2] : memref<32x512xbf16, #tpu.memory_space<vmem>>, vector<32x512xbf16>
    %cst = arith.constant dense<0.000000e+00> : vector<8x512xf32>
    %3 = tpu.matmul %1, %2, %cst {dimension_numbers = #tpu.dot_dimension_numbers<[1], [0], [0], [1], [0, 0, 1, 1], [], []>} : vector<8x32xbf16>, vector<32x512xbf16>, vector<8x512xf32> -> vector<8x512xf32>
    %c0_3 = arith.constant 0 : index
    %c0_4 = arith.constant 0 : index
    %4 = vector.load %arg3[%c0_3, %c0_4] : memref<1x512xf32, #tpu.memory_space<vmem>>, vector<1x512xf32>
    %5 = vector.broadcast %4 : vector<1x512xf32> to vector<8x512xf32>
    %6 = arith.addf %3, %5 : vector<8x512xf32>
    %cst_5 = arith.constant 0.000000e+00 : f32
    %7 = vector.broadcast %cst_5 : f32 to vector<8x512xf32>
    %8 = arith.cmpf ogt, %6, %7 : vector<8x512xf32>
    %cst_6 = arith.constant 2.000000e-01 : f32
    %9 = vector.broadcast %cst_6 : f32 to vector<8x512xf32>
    %10 = arith.mulf %9, %6 : vector<8x512xf32>
    %11 = arith.select %8, %6, %10 : vector<8x512xi1>, vector<8x512xf32>
    %12 = arith.truncf %11 : vector<8x512xf32> to vector<8x512xbf16>
    %c0_7 = arith.constant 0 : index
    %c0_8 = arith.constant 0 : index
    %13 = vector.load %arg4[%c0_7, %c0_8] : memref<512x1024xi8, #tpu.memory_space<vmem>>, vector<512x1024xi8>
    %14 = arith.sitofp %13 : vector<512x1024xi8> to vector<512x1024xf32>
    %15 = arith.truncf %14 : vector<512x1024xf32> to vector<512x1024xbf16>
    %cst_9 = arith.constant dense<0.000000e+00> : vector<8x1024xf32>
    %16 = tpu.matmul %12, %15, %cst_9 {dimension_numbers = #tpu.dot_dimension_numbers<[1], [0], [0], [1], [0, 0, 1, 1], [], []>} : vector<8x512xbf16>, vector<512x1024xbf16>, vector<8x1024xf32> -> vector<8x1024xf32>
    %c0_10 = arith.constant 0 : index
    %c0_11 = arith.constant 0 : index
    %17 = vector.load %arg5[%c0_10, %c0_11] : memref<1x1024xf32, #tpu.memory_space<vmem>>, vector<1x1024xf32>
    %18 = vector.broadcast %17 : vector<1x1024xf32> to vector<8x1024xf32>
    %19 = arith.mulf %16, %18 : vector<8x1024xf32>
    %c0_12 = arith.constant 0 : index
    %c0_13 = arith.constant 0 : index
    %20 = vector.load %arg6[%c0_12, %c0_13] : memref<1x1024xf32, #tpu.memory_space<vmem>>, vector<1x1024xf32>
    %21 = vector.broadcast %20 : vector<1x1024xf32> to vector<8x1024xf32>
    %22 = arith.addf %19, %21 : vector<8x1024xf32>
    %cst_14 = arith.constant 0.000000e+00 : f32
    %23 = vector.broadcast %cst_14 : f32 to vector<8x1024xf32>
    %24 = arith.cmpf ogt, %22, %23 : vector<8x1024xf32>
    %cst_15 = arith.constant 2.000000e-01 : f32
    %25 = vector.broadcast %cst_15 : f32 to vector<8x1024xf32>
    %26 = arith.mulf %25, %22 : vector<8x1024xf32>
    %27 = arith.select %24, %22, %26 : vector<8x1024xi1>, vector<8x1024xf32>
    %28 = arith.truncf %27 : vector<8x1024xf32> to vector<8x1024xbf16>
    %c0_16 = arith.constant 0 : index
    %c0_17 = arith.constant 0 : index
    %29 = vector.load %arg7[%c0_16, %c0_17] : memref<1024x512xi8, #tpu.memory_space<vmem>>, vector<1024x512xi8>
    %30 = arith.sitofp %29 : vector<1024x512xi8> to vector<1024x512xf32>
    %31 = arith.truncf %30 : vector<1024x512xf32> to vector<1024x512xbf16>
    %cst_18 = arith.constant dense<0.000000e+00> : vector<8x512xf32>
    %32 = tpu.matmul %28, %31, %cst_18 {dimension_numbers = #tpu.dot_dimension_numbers<[1], [0], [0], [1], [0, 0, 1, 1], [], []>} : vector<8x1024xbf16>, vector<1024x512xbf16>, vector<8x512xf32> -> vector<8x512xf32>
    %c0_19 = arith.constant 0 : index
    %c0_20 = arith.constant 0 : index
    %33 = vector.load %arg8[%c0_19, %c0_20] : memref<1x512xf32, #tpu.memory_space<vmem>>, vector<1x512xf32>
    %34 = vector.broadcast %33 : vector<1x512xf32> to vector<8x512xf32>
    %35 = arith.mulf %32, %34 : vector<8x512xf32>
    %c0_21 = arith.constant 0 : index
    %c0_22 = arith.constant 0 : index
    %36 = vector.load %arg9[%c0_21, %c0_22] : memref<1x512xf32, #tpu.memory_space<vmem>>, vector<1x512xf32>
    %37 = vector.broadcast %36 : vector<1x512xf32> to vector<8x512xf32>
    %38 = arith.addf %35, %37 : vector<8x512xf32>
    %39 = math.tanh %38 : vector<8x512xf32>
    %c0_23 = arith.constant 0 : index
    %c0_24 = arith.constant 0 : index
    %40 = vector.load %arg10[%c0_23, %c0_24] : memref<8x512xf32, #tpu.memory_space<vmem>>, vector<8x512xf32>
    tpu.vector_store %arg10[%c0_23, %c0_24], %39 {strides = array<i32>} : memref<8x512xf32, #tpu.memory_space<vmem>>, vector<8x512xf32>,
    return
  }
  func.func @transform_0(%arg0: i32) -> (i32, i32) {
    %c0_i32 = arith.constant 0 : i32
    %c0_i32_0 = arith.constant 0 : i32
    return %arg0, %c0_i32 : i32, i32
  }
  func.func @transform_1(%arg0: i32) -> (i32, i32) {
    %c0_i32 = arith.constant 0 : i32
    %c0_i32_0 = arith.constant 0 : i32
    %c0_i32_1 = arith.constant 0 : i32
    return %c0_i32, %c0_i32_0 : i32, i32
  }
  func.func @transform_2(%arg0: i32) -> (i32, i32) {
    %c0_i32 = arith.constant 0 : i32
    %c0_i32_0 = arith.constant 0 : i32
    %c0_i32_1 = arith.constant 0 : i32
    return %c0_i32, %c0_i32_0 : i32, i32
  }
  func.func @transform_3(%arg0: i32) -> (i32, i32) {
    %c0_i32 = arith.constant 0 : i32
    %c0_i32_0 = arith.constant 0 : i32
    %c0_i32_1 = arith.constant 0 : i32
    return %c0_i32, %c0_i32_0 : i32, i32
  }
  func.func @transform_4(%arg0: i32) -> (i32, i32) {
    %c0_i32 = arith.constant 0 : i32
    %c0_i32_0 = arith.constant 0 : i32
    %c0_i32_1 = arith.constant 0 : i32
    return %c0_i32, %c0_i32_0 : i32, i32
  }
  func.func @transform_5(%arg0: i32) -> (i32, i32) {
    %c0_i32 = arith.constant 0 : i32
    %c0_i32_0 = arith.constant 0 : i32
    %c0_i32_1 = arith.constant 0 : i32
    return %c0_i32, %c0_i32_0 : i32, i32
  }
  func.func @transform_6(%arg0: i32) -> (i32, i32) {
    %c0_i32 = arith.constant 0 : i32
    %c0_i32_0 = arith.constant 0 : i32
    %c0_i32_1 = arith.constant 0 : i32
    return %c0_i32, %c0_i32_0 : i32, i32
  }
  func.func @transform_7(%arg0: i32) -> (i32, i32) {
    %c0_i32 = arith.constant 0 : i32
    %c0_i32_0 = arith.constant 0 : i32
    %c0_i32_1 = arith.constant 0 : i32
    return %c0_i32, %c0_i32_0 : i32, i32
  }
  func.func @transform_8(%arg0: i32) -> (i32, i32) {
    %c0_i32 = arith.constant 0 : i32
    %c0_i32_0 = arith.constant 0 : i32
    %c0_i32_1 = arith.constant 0 : i32
    return %c0_i32, %c0_i32_0 : i32, i32
  }
  func.func @transform_9(%arg0: i32) -> (i32, i32) {
    %c0_i32 = arith.constant 0 : i32
    %c0_i32_0 = arith.constant 0 : i32
    return %arg0, %c0_i32 : i32, i32
  }
}

</mosaic_0001>

<bundles_post_ra>
// kernel: generator_forward.1
= control target key start
LH: loop header
LB: loop body
LE: loop exit
PB: predicated region body
PF: predicated region fallthrough
CT: control target
= control target key end

     0   :  { %14 = vsyncpa [#allocation3], 0  ;;  %s2314_s0 = inlined_call_operand.vmem [shape: f32[8,32], index: 0, kind: input, shape index: {}]   ;;  %s2315_s1 = inlined_call_operand.hbm [shape: bf16[32,512], index: 1, kind: input, shape index: {}]   ;;  %s2316_s2 = inlined_call_operand.hbm [shape: f32[1,512], index: 2, kind: input, shape index: {}]   ;;  %s2317_s3 = inlined_call_operand.hbm [shape: s8[512,1024], index: 3, kind: input, shape index: {}]   ;;  %s2318_s4 = inlined_call_operand.vmem [shape: f32[1,1024], index: 4, kind: input, shape index: {}]   ;;  %s2319_s5 = inlined_call_operand.vmem [shape: f32[1,1024], index: 5, kind: input, shape index: {}]   ;;  %s2320_s6 = inlined_call_operand.hbm [shape: s8[1024,512], index: 6, kind: input, shape index: {}]   ;;  %s2321_s7 = inlined_call_operand.vmem [shape: f32[1,512], index: 7, kind: input, shape index: {}]   ;;  %s2322_s8 = inlined_call_operand.vmem [shape: f32[1,512], index: 8, kind: input, shape index: {}]   ;;  %s2323_s9 = inlined_call_operand.vmem [shape: f32[8,512], index: 9, kind: output, shape index: {}]  }
   0x1   :  { %15 = vsyncpa [#allocation5], 0 }
   0x2   :  { %16 = vsyncpa [#allocation8], 0  ;;  %s2060_s30 = smov [#allocation4]   ;;  %s2061_s11 = smov [#allocation2]  }
   0x3   :  { %s37_s10 = sshll.u32 %s2060_s30, 4  ;;  %s24_s12 = sshll.u32 %s2061_s11, 4  ;;  %s38_s10 = int_to_ptr.vmem [resolvable:$true] %s37_s10  ;;  %s2121_s12 = int_to_ptr.vmem [resolvable:$true] %s24_s12 }
   0x4   :  { %s1966_s15 = scalar_lea.hbm %s2316_s2, 64 }
   0x5   :  { %p1967_p0 = scmp.ne.s32.totalorder %s2316_s2, %s1966_s15  ;;  %p1970_p1 = scmp.lt.u32.totalorder %s1966_s15, %s2316_s2 }
   0x7   :  { %p1972_p2 = pnand %p1970_p1, %p1967_p0 }
   0x9   :  { %1975 = shalt.err (!%p1972_p2)
}
   0xa   :  { %s1976_s20 = scalar_lea.vmem %s38_s10, 64  ;;  %p1981_p4 = scmp.lt.s32.totalorder %s38_s10, %s38_s10 }
   0xb   :  { %p1977_p3 = scmp.ne.s32.totalorder %s38_s10, %s1976_s20  ;;  %p1982_p5 = scmp.lt.s32.totalorder %s1976_s20, %s1976_s20 }
   0xd   :  { %p1983_p6 = por %p1982_p5, %p1981_p4 }
   0xf   :  { %p1984_p7 = pnand %p1983_p6, %p1977_p3 }
  0x11   :  { %1987 = shalt.err (!%p1984_p7)
}
  0x12   :  { %40 = dma.hbm_to_vmem [thread:$0]  %s2316_s2, 64, %s38_s10, [#allocation5]  }
  0x13   :  { %s1988_s25 = scalar_lea.hbm %s2315_s1, 1024 }
  0x14   :  { %p1989_p8 = scmp.ne.s32.totalorder %s2315_s1, %s1988_s25  ;;  %p1992_p9 = scmp.lt.u32.totalorder %s1988_s25, %s2315_s1 }
  0x16   :  { %p1994_p10 = pnand %p1992_p9, %p1989_p8 }
  0x18   :  { %1997 = shalt.err (!%p1994_p10)
}
  0x19   :  { %s1998_s30 = scalar_lea.vmem %s2121_s12, 1024  ;;  %p2003_p12 = scmp.lt.s32.totalorder %s2121_s12, %s2121_s12 }
  0x1a   :  { %p1999_p11 = scmp.ne.s32.totalorder %s2121_s12, %s1998_s30  ;;  %p2004_p13 = scmp.lt.s32.totalorder %s1998_s30, %s1998_s30 }
  0x1c   :  { %p2005_p0 = por %p2004_p13, %p2003_p12 }
  0x1e   :  { %p2006_p1 = pnand %p2005_p0, %p1999_p11 }
  0x20   :  { %2009 = shalt.err (!%p2006_p1)
}
  0x21   :  { %s2062_s2 = smov 256   ;;  %s2063_s10 = smov 16  }
  0x22   :  { %30 = dma.hbm_to_vmem [thread:$0]  %s2315_s1, 1024, %s2121_s12, [#allocation3], %s2062_s2, %s2062_s2, %s2063_s10  }
  0x23   :  { %s2064_s14 = smov [#allocation6]   ;;  %s2010_s18 = scalar_lea.hbm %s2317_s3, 16384 }
  0x24   :  { %s46_s15 = sshll.u32 %s2064_s14, 4  ;;  %p2011_p2 = scmp.ne.s32.totalorder %s2317_s3, %s2010_s18  ;;  %s47_s15 = int_to_ptr.vmem [resolvable:$true] %s46_s15 }
  0x25   :  { %p2014_p3 = scmp.lt.u32.totalorder %s2010_s18, %s2317_s3 }
  0x27   :  { %p2016_p4 = pnand %p2014_p3, %p2011_p2 }
  0x29   :  { %2019 = shalt.err (!%p2016_p4)
}
  0x2a   :  { %s2020_s23 = scalar_lea.vmem %s47_s15, 16384  ;;  %p2025_p6 = scmp.lt.s32.totalorder %s47_s15, %s47_s15 }
  0x2b   :  { %p2021_p5 = scmp.ne.s32.totalorder %s47_s15, %s2020_s23  ;;  %p2026_p7 = scmp.lt.s32.totalorder %s2020_s23, %s2020_s23 }
  0x2d   :  { %p2027_p8 = por %p2026_p7, %p2025_p6 }
  0x2f   :  { %p2028_p9 = pnand %p2027_p8, %p2021_p5 }
  0x31   :  { %2031 = shalt.err (!%p2028_p9)
}
  0x32   :  { %s2065_s1 = smov 1024   ;;  %s2066_s12 = smov 64  }
  0x33   :  { %52 = dma.hbm_to_vmem [thread:$0]  %s2317_s3, 16384, %s47_s15, [#allocation5], %s2065_s1, %s2065_s1, %s2066_s12  }
  0x34   :  { %s2067_s26 = smov [#allocation7]   ;;  %s2032_s30 = scalar_lea.hbm %s2320_s6, 16384 }
  0x35   :  { %s62_s27 = sshll.u32 %s2067_s26, 4  ;;  %p2033_p10 = scmp.ne.s32.totalorder %s2320_s6, %s2032_s30  ;;  %s63_s27 = int_to_ptr.vmem [resolvable:$true] %s62_s27 }
  0x36   :  { %p2036_p11 = scmp.lt.u32.totalorder %s2032_s30, %s2320_s6 }
  0x38   :  { %p2038_p12 = pnand %p2036_p11, %p2033_p10 }
  0x3a   :  { %2041 = shalt.err (!%p2038_p12)
}
  0x3b   :  { %s2042_s14 = scalar_lea.vmem %s63_s27, 16384  ;;  %p2047_p0 = scmp.lt.s32.totalorder %s63_s27, %s63_s27 }
  0x3c   :  { %p2043_p13 = scmp.ne.s32.totalorder %s63_s27, %s2042_s14  ;;  %p2048_p1 = scmp.lt.s32.totalorder %s2042_s14, %s2042_s14 }
  0x3e   :  { %p2049_p2 = por %p2048_p1, %p2047_p0 }
  0x40   :  { %p2050_p3 = pnand %p2049_p2, %p2043_p13 }
  0x42   :  { %2053 = shalt.err (!%p2050_p3)
}
  0x43   :  { %s2068_s3 = smov 512   ;;  %s2069_s15 = smov 32  }
  0x44   :  { %68 = dma.hbm_to_vmem [thread:$0]  %s2320_s6, 16384, %s63_s27, [#allocation8], %s2068_s3, %s2068_s3, %s2069_s15  }
  0x45   :  { %2054 = dma.done.wait [#allocation3], 1024  }
  0x46   :  { %2055 = vsyncadd [#allocation3], 4294966272 }
  0x47   :  { %2056 = dma.done.wait [#allocation5], 16448  }
  0x48   :  { %2057 = vsyncadd [#allocation5], 4294950848 }
  0x49   :  { %2058 = dma.done.wait [#allocation8], 16384  }
  0x4a   :  { %2059 = vsyncadd [#allocation8], 4294950912  ;;  %v2070_v0 = vmov 0   ;;  %v1944_v1 = vld [vmem:[#allocation2 + $0x4] ss:$16 sps:$4 sm:$0xff]   ;;  %v86_v5 = vld [vmem:[%s2314_s0] sm:$0xff] }
  0x4b   :  { %194 = vmatprep.mubr.bf16.mxu0 %v2070_v0  ;;  %235 = vmatprep.mubr.bf16.mxu1 %v2070_v0  ;;  %v1946_v2 = vld [vmem:[#allocation2] ss:$16 sps:$4 sm:$0xff]   ;;  %v1947_v3 = vld [vmem:[#allocation2 + $0x24] ss:$16 sps:$4 sm:$0xff]   ;;  %v1950_v6 = vld [vmem:[#allocation2 + $0xc] ss:$16 sps:$4 sm:$0xff]   ;;  %v87_v10 = vpack.c.bf16 %v86_v5, %v86_v5 }
  0x4c   :  { %162 = vmatprep.subr.bf16.mxu0 %v1944_v1  ;;  %v1949_v4 = vld [vmem:[#allocation2 + $0x20] ss:$16 sps:$4 sm:$0xff]   ;;  %v1952_v7 = vld [vmem:[#allocation2 + $0x8] ss:$16 sps:$4 sm:$0xff]   ;;  %203 = vmatprep.subr.bf16.mxu1 %v1950_v6  ;;  %v1953_v8 = vld [vmem:[#allocation2 + $0x2c] ss:$16 sps:$4 sm:$0xff]  }
  0x4d   :  { %163 = vmatpush1.bf16.msra.mxu0 %v1946_v2  ;;  %v261_v9 = vld [vmem:[#allocation6 + $0x8] sm:$0xff]  ;;  %204 = vmatpush1.bf16.msra.mxu1 %v1952_v7  ;;  %v1955_v11 = vld [vmem:[#allocation2 + $0x28] ss:$16 sps:$4 sm:$0xff]   ;;  %v263_v13 = vld [vmem:[#allocation6 + $0x18] sm:$0xff]  ;;  %vm158_vm0 = vcmask 261120  }
  0x4e   :  { %164 = vmatprep.subr.bf16.mxu0 %v1947_v3  ;;  %v389_v12 = vunpack.c.l.s8.bf16 %v261_v9  ;;  %v260_v14 = vld [vmem:[#allocation6] sm:$0xff]  ;;  %205 = vmatprep.subr.bf16.mxu1 %v1953_v8  ;;  %v391_v15 = vunpack.c.l.s8.bf16 %v263_v13  ;;  %v262_v17 = vld [vmem:[#allocation6 + $0x10] sm:$0xff]  ;;  %v397_v18 = vunpack.c.h.s8.bf16 %v261_v9  ;;  %v269_v19 = vld [vmem:[#allocation6 + $0x48] sm:$0xff]  ;;  %v399_v21 = vunpack.c.h.s8.bf16 %v263_v13 }
  0x4f   :  { %v388_v16 = vunpack.c.l.s8.bf16 %v260_v14  ;;  %v390_v20 = vunpack.c.l.s8.bf16 %v262_v17  ;;  %v396_v22 = vunpack.c.h.s8.bf16 %v260_v14  ;;  %v405_v23 = vunpack.c.l.s8.bf16 %v269_v19  ;;  %v271_v24 = vld [vmem:[#allocation6 + $0x58] sm:$0xff]  ;;  %v268_v25 = vld [vmem:[#allocation6 + $0x40] sm:$0xff]  ;;  %v270_v29 = vld [vmem:[#allocation6 + $0x50] sm:$0xff] }
  0x50   :  { %v398_v26 = vunpack.c.h.s8.bf16 %v262_v17  ;;  %v407_v27 = vunpack.c.l.s8.bf16 %v271_v24  ;;  %v404_v28 = vunpack.c.l.s8.bf16 %v268_v25  ;;  %v413_v30 = vunpack.c.h.s8.bf16 %v269_v19  ;;  %v277_v31 = vld [vmem:[#allocation6 + $0x88] sm:$0xff]  ;;  %v279_v36 = vld [vmem:[#allocation6 + $0x98] sm:$0xff]  ;;  %v276_v37 = vld [vmem:[#allocation6 + $0x80] sm:$0xff] }
  0x51   :  { %165 = vmatpush1.bf16.msra.mxu0 %v1949_v4  ;;  %206 = vmatpush1.bf16.msra.mxu1 %v1955_v11  ;;  %v406_v32 = vunpack.c.l.s8.bf16 %v270_v29  ;;  %v415_v33 = vunpack.c.h.s8.bf16 %v271_v24  ;;  %v412_v34 = vunpack.c.h.s8.bf16 %v268_v25  ;;  %v421_v35 = vunpack.c.l.s8.bf16 %v277_v31  ;;  %v278_v41 = vld [vmem:[#allocation6 + $0x90] sm:$0xff]  ;;  %v285_v43 = vld [vmem:[#allocation6 + $0xc8] sm:$0xff]  ;;  %v287_v48 = vld [vmem:[#allocation6 + $0xd8] sm:$0xff] }
  0x52   :  { %644 = vmatprep.subr.bf16.mxu0 %v389_v12  ;;  %726 = vmatprep.subr.bf16.mxu1 %v391_v15  ;;  %v414_v38 = vunpack.c.h.s8.bf16 %v270_v29  ;;  %v423_v39 = vunpack.c.l.s8.bf16 %v279_v36  ;;  %v420_v40 = vunpack.c.l.s8.bf16 %v276_v37  ;;  %v429_v42 = vunpack.c.h.s8.bf16 %v277_v31  ;;  %v284_v49 = vld [vmem:[#allocation6 + $0xc0] sm:$0xff]  ;;  %v286_v53 = vld [vmem:[#allocation6 + $0xd0] sm:$0xff]  ;;  %v293_v55 = vld [vmem:[#allocation6 + $0x108] sm:$0xff] }
  0x53   :  { %v422_v44 = vunpack.c.l.s8.bf16 %v278_v41  ;;  %v431_v45 = vunpack.c.h.s8.bf16 %v279_v36  ;;  %v428_v46 = vunpack.c.h.s8.bf16 %v276_v37  ;;  %v437_v47 = vunpack.c.l.s8.bf16 %v285_v43  ;;  %v295_v60 = vld [vmem:[#allocation6 + $0x118] sm:$0xff]  ;;  %v292_v61 = vld [vmem:[#allocation6 + $0x100] sm:$0xff]  ;;  %v294_v1 = vld [vmem:[#allocation6 + $0x110] sm:$0xff] }
  0x54   :  { %1891 = vmatmul.mubr.msk.bf16.vlgmr.msra.gmra.mrb[0].mxu0 %vm158_vm0, %v87_v10  ;;  %1892 = vmatmul.mubr.msk.bf16.vlgmr.msra.gmra.mrb[0].mxu1 %vm158_vm0, %v87_v10  ;;  %v430_v50 = vunpack.c.h.s8.bf16 %v278_v41  ;;  %v439_v51 = vunpack.c.l.s8.bf16 %v287_v48  ;;  %v436_v52 = vunpack.c.l.s8.bf16 %v284_v49  ;;  %v445_v54 = vunpack.c.h.s8.bf16 %v285_v43  ;;  %v301_v3 = vld [vmem:[#allocation6 + $0x148] sm:$0xff]  ;;  %v303_v8 = vld [vmem:[#allocation6 + $0x158] sm:$0xff]  ;;  %v300_v9 = vld [vmem:[#allocation6 + $0x140] sm:$0xff] }
  0x55   :  { %645 = vmatpush1.bf16.msra.mxu0 %v388_v16  ;;  %727 = vmatpush1.bf16.msra.mxu1 %v390_v20  ;;  %v438_v56 = vunpack.c.l.s8.bf16 %v286_v53  ;;  %v447_v57 = vunpack.c.h.s8.bf16 %v287_v48  ;;  %v444_v58 = vunpack.c.h.s8.bf16 %v284_v49  ;;  %v453_v59 = vunpack.c.l.s8.bf16 %v293_v55  ;;  %v302_v13 = vld [vmem:[#allocation6 + $0x150] sm:$0xff]  ;;  %v309_v15 = vld [vmem:[#allocation6 + $0x188] sm:$0xff]  ;;  %v311_v20 = vld [vmem:[#allocation6 + $0x198] sm:$0xff] }
  0x56   :  { %646 = vmatprep.subr.bf16.mxu0 %v397_v18  ;;  %728 = vmatprep.subr.bf16.mxu1 %v399_v21  ;;  %v446_v62 = vunpack.c.h.s8.bf16 %v286_v53  ;;  %v455_v63 = vunpack.c.l.s8.bf16 %v295_v60  ;;  %v452_v0 = vunpack.c.l.s8.bf16 %v292_v61  ;;  %v461_v2 = vunpack.c.h.s8.bf16 %v293_v55  ;;  %v308_v21 = vld [vmem:[#allocation6 + $0x180] sm:$0xff]  ;;  %v310_v25 = vld [vmem:[#allocation6 + $0x190] sm:$0xff]  ;;  %v317_v31 = vld [vmem:[#allocation6 + $0x1c8] sm:$0xff] }
  0x57   :  { %v454_v4 = vunpack.c.l.s8.bf16 %v294_v1  ;;  %v463_v5 = vunpack.c.h.s8.bf16 %v295_v60  ;;  %v460_v6 = vunpack.c.h.s8.bf16 %v292_v61  ;;  %v469_v7 = vunpack.c.l.s8.bf16 %v301_v3  ;;  %v318_v36 = vld [vmem:[#allocation6 + $0x1d0] sm:$0xff]  ;;  %v325_v43 = vld [vmem:[#allocation6 + $0x208] sm:$0xff] }
  0x58   :  { %v462_v10 = vunpack.c.h.s8.bf16 %v294_v1  ;;  %v471_v11 = vunpack.c.l.s8.bf16 %v303_v8  ;;  %v468_v12 = vunpack.c.l.s8.bf16 %v300_v9  ;;  %v477_v14 = vunpack.c.h.s8.bf16 %v301_v3 }
  0x59   :  { %647 = vmatpush1.bf16.msra.mxu0 %v396_v22  ;;  %729 = vmatpush1.bf16.msra.mxu1 %v398_v26  ;;  %v470_v16 = vunpack.c.l.s8.bf16 %v302_v13  ;;  %v479_v17 = vunpack.c.h.s8.bf16 %v303_v8  ;;  %v476_v18 = vunpack.c.h.s8.bf16 %v300_v9  ;;  %v485_v19 = vunpack.c.l.s8.bf16 %v309_v15 }
  0x5a   :  { %648 = vmatprep.subr.bf16.mxu0 %v405_v23  ;;  %730 = vmatprep.subr.bf16.mxu1 %v407_v27  ;;  %v478_v22 = vunpack.c.h.s8.bf16 %v302_v13  ;;  %v487_v23 = vunpack.c.l.s8.bf16 %v311_v20  ;;  %v484_v24 = vunpack.c.l.s8.bf16 %v308_v21  ;;  %v493_v26 = vunpack.c.h.s8.bf16 %v309_v15 }
  0x5b   :  { %v486_v27 = vunpack.c.l.s8.bf16 %v310_v25  ;;  %v492_v29 = vunpack.c.h.s8.bf16 %v308_v21 }
  0x5d   :  { %649 = vmatpush1.bf16.msra.mxu0 %v404_v28  ;;  %731 = vmatpush1.bf16.msra.mxu1 %v406_v32  ;;  %v495_v28 = vunpack.c.h.s8.bf16 %v311_v20  ;;  %v319_v32 = vld [vmem:[#allocation6 + $0x1d8] sm:$0xff] }
  0x5e   :  { %650 = vmatprep.subr.bf16.mxu0 %v413_v30  ;;  %732 = vmatprep.subr.bf16.mxu1 %v415_v33  ;;  %v494_v30 = vunpack.c.h.s8.bf16 %v310_v25  ;;  %v501_v33 = vunpack.c.l.s8.bf16 %v317_v31  ;;  %v334_v25 = vld [vmem:[#allocation6 + $0x250] sm:$0xff] }
  0x61   :  { %651 = vmatpush1.bf16.msra.mxu0 %v412_v34  ;;  %733 = vmatpush1.bf16.msra.mxu1 %v414_v38  ;;  %v503_v34 = vunpack.c.l.s8.bf16 %v319_v32  ;;  %v502_v38 = vunpack.c.l.s8.bf16 %v318_v36 }
  0x62   :  { %652 = vmatprep.subr.bf16.mxu0 %v421_v35  ;;  %734 = vmatprep.subr.bf16.mxu1 %v423_v39  ;;  %v316_v35 = vld [vmem:[#allocation6 + $0x1c0] sm:$0xff]  ;;  %v509_v39 = vunpack.c.h.s8.bf16 %v317_v31  ;;  %v343_v31 = vld [vmem:[#allocation6 + $0x298] sm:$0xff] }
  0x63   :  { %v500_v37 = vunpack.c.l.s8.bf16 %v316_v35  ;;  %v508_v41 = vunpack.c.h.s8.bf16 %v316_v35  ;;  %v551_v35 = vunpack.c.l.s8.bf16 %v343_v31 }
  0x65   :  { %653 = vmatpush1.bf16.msra.mxu0 %v420_v40  ;;  %735 = vmatpush1.bf16.msra.mxu1 %v422_v44  ;;  %v511_v40 = vunpack.c.h.s8.bf16 %v319_v32  ;;  %v327_v44 = vld [vmem:[#allocation6 + $0x218] sm:$0xff] }
  0x66   :  { %654 = vmatprep.subr.bf16.mxu0 %v429_v42  ;;  %736 = vmatprep.subr.bf16.mxu1 %v431_v45  ;;  %v510_v42 = vunpack.c.h.s8.bf16 %v318_v36  ;;  %v517_v45 = vunpack.c.l.s8.bf16 %v325_v43  ;;  %v527_v15 = vunpack.c.h.s8.bf16 %v327_v44  ;;  %v340_v36 = vld [vmem:[#allocation6 + $0x280] sm:$0xff] }
  0x69   :  { %655 = vmatpush1.bf16.msra.mxu0 %v428_v46  ;;  %737 = vmatpush1.bf16.msra.mxu1 %v430_v50  ;;  %v519_v46 = vunpack.c.l.s8.bf16 %v327_v44  ;;  %v2186_v50 = vld [vmem:[#allocation4] sm:$0xf]  ;;  %v556_v44 = vunpack.c.h.s8.bf16 %v340_v36 }
  0x6a   :  { %656 = vmatprep.subr.bf16.mxu0 %v437_v47  ;;  %738 = vmatprep.subr.bf16.mxu1 %v439_v51  ;;  %v98_v47 = vlaneseq }
  0x6c   :  { %v2181_v48 = vshrl.u32 %v98_v47, 7 }
  0x6d   :  { %657 = vmatpush1.bf16.msra.mxu0 %v436_v52  ;;  %739 = vmatpush1.bf16.msra.mxu1 %v438_v56 }
  0x6e   :  { %658 = vmatprep.subr.bf16.mxu0 %v445_v54  ;;  %740 = vmatprep.subr.bf16.mxu1 %v447_v57  ;;  %v2184_v49 = vsub.s32 0, %v2181_v48  ;;  %v2189_v51 = vsub.s32 1, %v2181_v48  ;;  %v2194_v53 = vsub.s32 3, %v2181_v48 }
  0x70   :  { %v101_v52 = vrot.slane %v2186_v50, %v2184_v49  ;;  %v105_v54 = vrot.slane %v2186_v50, %v2189_v51 }
  0x71   :  { %659 = vmatpush1.bf16.msra.mxu0 %v444_v58  ;;  %741 = vmatpush1.bf16.msra.mxu1 %v446_v62  ;;  %v113_v58 = vrot.slane %v2186_v50, %v2194_v53 }
  0x72   :  { %660 = vmatprep.subr.bf16.mxu0 %v453_v59  ;;  %742 = vmatprep.subr.bf16.mxu1 %v455_v63  ;;  %v324_v63 = vld [vmem:[#allocation6 + $0x200] sm:$0xff] }
  0x73   :  { %v516_v8 = vunpack.c.l.s8.bf16 %v324_v63  ;;  %v524_v20 = vunpack.c.h.s8.bf16 %v324_v63 }
  0x75   :  { %661 = vmatpush1.bf16.msra.mxu0 %v452_v0  ;;  %743 = vmatpush1.bf16.msra.mxu1 %v454_v4 }
  0x76   :  { %662 = vmatprep.subr.bf16.mxu0 %v461_v2  ;;  %744 = vmatprep.subr.bf16.mxu1 %v463_v5  ;;  %v326_v2 = vld [vmem:[#allocation6 + $0x210] sm:$0xff] }
  0x77   :  { %v526_v21 = vunpack.c.h.s8.bf16 %v326_v2 }
  0x79   :  { %663 = vmatpush1.bf16.msra.mxu0 %v460_v6  ;;  %745 = vmatpush1.bf16.msra.mxu1 %v462_v10 }
  0x7a   :  { %664 = vmatprep.subr.bf16.mxu0 %v469_v7  ;;  %746 = vmatprep.subr.bf16.mxu1 %v471_v11  ;;  %v518_v11 = vunpack.c.l.s8.bf16 %v326_v2  ;;  %v356_v2 = vld [vmem:[#allocation6 + $0x300] sm:$0xff] }
  0x7d   :  { %665 = vmatpush1.bf16.msra.mxu0 %v468_v12  ;;  %747 = vmatpush1.bf16.msra.mxu1 %v470_v16  ;;  %v333_v16 = vld [vmem:[#allocation6 + $0x248] sm:$0xff] }
  0x7e   :  { %666 = vmatprep.subr.bf16.mxu0 %v477_v14  ;;  %748 = vmatprep.subr.bf16.mxu1 %v479_v17  ;;  %v525_v14 = vunpack.c.h.s8.bf16 %v325_v43  ;;  %v335_v17 = vld [vmem:[#allocation6 + $0x258] sm:$0xff] }
  0x7f   :  { %v351_v43 = vld [vmem:[#allocation6 + $0x2d8] sm:$0xff] }
  0x80   :  { %v567_v47 = vunpack.c.l.s8.bf16 %v351_v43 }
  0x81   :  { %667 = vmatpush1.bf16.msra.mxu0 %v476_v18  ;;  %749 = vmatpush1.bf16.msra.mxu1 %v478_v22  ;;  %v533_v22 = vunpack.c.l.s8.bf16 %v333_v16 }
  0x82   :  { %668 = vmatprep.subr.bf16.mxu0 %v485_v19  ;;  %750 = vmatprep.subr.bf16.mxu1 %v487_v23  ;;  %v535_v23 = vunpack.c.l.s8.bf16 %v335_v17 }
  0x85   :  { %669 = vmatpush1.bf16.msra.mxu0 %v484_v24  ;;  %751 = vmatpush1.bf16.msra.mxu1 %v486_v27  ;;  %v332_v24 = vld [vmem:[#allocation6 + $0x240] sm:$0xff]  ;;  %v534_v27 = vunpack.c.l.s8.bf16 %v334_v25 }
  0x86   :  { %670 = vmatprep.subr.bf16.mxu0 %v493_v26  ;;  %752 = vmatprep.subr.bf16.mxu1 %v495_v28  ;;  %v532_v26 = vunpack.c.l.s8.bf16 %v332_v24  ;;  %v541_v28 = vunpack.c.h.s8.bf16 %v333_v16  ;;  %v540_v32 = vunpack.c.h.s8.bf16 %v332_v24  ;;  %v364_v16 = vld [vmem:[#allocation6 + $0x340] sm:$0xff]  ;;  %v375_v24 = vld [vmem:[#allocation6 + $0x398] sm:$0xff] }
  0x89   :  { %671 = vmatpush1.bf16.msra.mxu0 %v492_v29  ;;  %753 = vmatpush1.bf16.msra.mxu1 %v494_v30  ;;  %v543_v29 = vunpack.c.h.s8.bf16 %v335_v17  ;;  %v341_v30 = vld [vmem:[#allocation6 + $0x288] sm:$0xff]  ;;  %v366_v17 = vld [vmem:[#allocation6 + $0x350] sm:$0xff] }
  0x8a   :  { %672 = vmatprep.subr.bf16.mxu0 %v501_v33  ;;  %754 = vmatprep.subr.bf16.mxu1 %v503_v34  ;;  %v542_v33 = vunpack.c.h.s8.bf16 %v334_v25  ;;  %v549_v34 = vunpack.c.l.s8.bf16 %v341_v30  ;;  %v604_v25 = vunpack.c.h.s8.bf16 %v364_v16 }
  0x8d   :  { %673 = vmatpush1.bf16.msra.mxu0 %v500_v37  ;;  %755 = vmatpush1.bf16.msra.mxu1 %v502_v38  ;;  %v342_v37 = vld [vmem:[#allocation6 + $0x290] sm:$0xff]  ;;  %v548_v38 = vunpack.c.l.s8.bf16 %v340_v36 }
  0x8e   :  { %674 = vmatprep.subr.bf16.mxu0 %v509_v39  ;;  %756 = vmatprep.subr.bf16.mxu1 %v511_v40  ;;  %v550_v39 = vunpack.c.l.s8.bf16 %v342_v37  ;;  %v557_v40 = vunpack.c.h.s8.bf16 %v341_v30  ;;  %v374_v30 = vld [vmem:[#allocation6 + $0x390] sm:$0xff] }
  0x91   :  { %675 = vmatpush1.bf16.msra.mxu0 %v508_v41  ;;  %757 = vmatpush1.bf16.msra.mxu1 %v510_v42  ;;  %v559_v41 = vunpack.c.h.s8.bf16 %v343_v31  ;;  %v349_v42 = vld [vmem:[#allocation6 + $0x2c8] sm:$0xff]  ;;  %v2215_v31 = vsub.s32 2, %v2181_v48 }
  0x92   :  { %685 = vmatprep.subr.bf16.mxu0 %v517_v45  ;;  %767 = vmatprep.subr.bf16.mxu1 %v519_v46  ;;  %v558_v45 = vunpack.c.h.s8.bf16 %v342_v37  ;;  %v565_v46 = vunpack.c.l.s8.bf16 %v349_v42  ;;  %v381_v37 = vld [vmem:[#allocation6 + $0x3c8] sm:$0xff] }
  0x93   :  { %v109_v36 = vrot.slane %v2186_v50, %v2215_v31  ;;  %v637_v50 = vunpack.c.h.s8.bf16 %v381_v37 }
 0x127   :  { %v196_v55 = vpop.f32.mrb[0].mxu0  ;;  %v2200_v0 = vpop.f32.mrb[0].mxu1 }
 0x128   :  { %v197_v56 = vadd.f32 %v196_v55, %v101_v52  ;;  %v198_v57 = vpop.f32.mrb[1].mxu0  ;;  %v239_v3 = vpop.f32.mrb[1].mxu1  ;;  %v348_v52 = vld [vmem:[#allocation6 + $0x2c0] sm:$0xff] }
 0x129   :  { %v199_v59 = vadd.f32 %v198_v57, %v105_v54  ;;  %v200_v60 = vpop.f32.mrb[2].mxu0  ;;  %v240_v5 = vadd.f32 %v239_v3, %v113_v58  ;;  %v241_v6 = vpop.f32.mrb[2].mxu1  ;;  %v350_v54 = vld [vmem:[#allocation6 + $0x2d0] sm:$0xff]  ;;  %v564_v55 = vunpack.c.l.s8.bf16 %v348_v52  ;;  %v573_v57 = vunpack.c.h.s8.bf16 %v349_v42 }
 0x12a   :  { %vm244_vm1 = vcmp.gt.f32.partialorder %v197_v56, 0.0  ;;  %v248_v61 = vmul.f32 0.2, %v197_v56  ;;  %v201_v62 = vpop.f32.mrb[3].mxu0  ;;  %v242_v9 = vpop.f32.mrb[3].mxu1  ;;  %v575_v58 = vunpack.c.h.s8.bf16 %v351_v43  ;;  %v359_v60 = vld [vmem:[#allocation6 + $0x318] sm:$0xff] }
 0x12b   :  { %vm245_vm2 = vcmp.gt.f32.partialorder %v199_v59, 0.0  ;;  %v249_v1 = vmul.f32 0.2, %v199_v59  ;;  %vm247_vm3 = vcmp.gt.f32.partialorder %v240_v5, 0.0  ;;  %v251_v12 = vmul.f32 0.2, %v240_v5 }
 0x12c   :  { %v252_v4 = vsel %vm244_vm1, %v197_v56, %v248_v61  ;;  %v566_v56 = vunpack.c.l.s8.bf16 %v350_v54  ;;  %v572_v61 = vunpack.c.h.s8.bf16 %v348_v52  ;;  %v574_v62 = vunpack.c.h.s8.bf16 %v350_v54  ;;  %v358_v3 = vld [vmem:[#allocation6 + $0x310] sm:$0xff]  ;;  %v367_v9 = vld [vmem:[#allocation6 + $0x358] sm:$0xff]  ;;  %v380_v43 = vld [vmem:[#allocation6 + $0x3c0] sm:$0xff] }
 0x12d   :  { %v253_v7 = vsel %vm245_vm2, %v199_v59, %v249_v1  ;;  %v2204_v13 = vpack.c.bf16 %v252_v4, %v252_v4  ;;  %v255_v18 = vsel %vm247_vm3, %v240_v5, %v251_v12  ;;  %v357_v59 = vld [vmem:[#allocation6 + $0x308] sm:$0xff]  ;;  %v583_v1 = vunpack.c.l.s8.bf16 %v359_v60 }
 0x12e   :  { %v2202_v10 = vpack.c.bf16 %v253_v7, %v253_v7  ;;  %v2210_v19 = vpack.c.bf16 %v255_v18, %v255_v18  ;;  %v581_v63 = vunpack.c.l.s8.bf16 %v357_v59  ;;  %v580_v4 = vunpack.c.l.s8.bf16 %v356_v2 }
 0x12f   :  { %v582_v5 = vunpack.c.l.s8.bf16 %v358_v3  ;;  %v589_v6 = vunpack.c.h.s8.bf16 %v357_v59  ;;  %v591_v7 = vunpack.c.h.s8.bf16 %v359_v60  ;;  %v590_v12 = vunpack.c.h.s8.bf16 %v358_v3  ;;  %v264_v60 = vld [vmem:[#allocation6 + $0x20] sm:$0xff] }
 0x130   :  { %676 = vmatprep.mubr.bf16.mxu0 %v2202_v10  ;;  %758 = vmatprep.mubr.bf16.mxu1 %v2202_v10  ;;  %v596_v18 = vunpack.c.l.s8.bf16 %v364_v16 }
 0x131   :  { %677 = vmatmul.mubr.bf16.vlgmr.msra.gmra.mrb[4].mxu0 %v2204_v13  ;;  %759 = vmatmul.mubr.bf16.vlgmr.msra.gmra.mrb[4].mxu1 %v2204_v13 }
 0x132   :  { %686 = vmatpush1.bf16.msra.mxu0 %v516_v8  ;;  %768 = vmatpush1.bf16.msra.mxu1 %v518_v11  ;;  %v365_v8 = vld [vmem:[#allocation6 + $0x348] sm:$0xff]  ;;  %v588_v11 = vunpack.c.h.s8.bf16 %v356_v2 }
 0x133   :  { %687 = vmatprep.subr.bf16.mxu0 %v525_v14  ;;  %769 = vmatprep.subr.bf16.mxu1 %v527_v15  ;;  %v597_v14 = vunpack.c.l.s8.bf16 %v365_v8  ;;  %v599_v15 = vunpack.c.l.s8.bf16 %v367_v9 }
 0x134   :  { %717 = vmatprep.mubr.bf16.mxu0 %v2210_v19  ;;  %799 = vmatprep.mubr.bf16.mxu1 %v2210_v19 }
 0x136   :  { %688 = vmatpush1.bf16.msra.mxu0 %v524_v20  ;;  %770 = vmatpush1.bf16.msra.mxu1 %v526_v21  ;;  %v598_v20 = vunpack.c.l.s8.bf16 %v366_v17  ;;  %v605_v21 = vunpack.c.h.s8.bf16 %v365_v8 }
 0x137   :  { %689 = vmatprep.subr.bf16.mxu0 %v533_v22  ;;  %771 = vmatprep.subr.bf16.mxu1 %v535_v23  ;;  %v607_v22 = vunpack.c.h.s8.bf16 %v367_v9  ;;  %v373_v23 = vld [vmem:[#allocation6 + $0x388] sm:$0xff] }
 0x13a   :  { %690 = vmatpush1.bf16.msra.mxu0 %v532_v26  ;;  %772 = vmatpush1.bf16.msra.mxu1 %v534_v27  ;;  %v606_v26 = vunpack.c.h.s8.bf16 %v366_v17  ;;  %v613_v27 = vunpack.c.l.s8.bf16 %v373_v23 }
 0x13b   :  { %691 = vmatprep.subr.bf16.mxu0 %v541_v28  ;;  %773 = vmatprep.subr.bf16.mxu1 %v543_v29  ;;  %v615_v28 = vunpack.c.l.s8.bf16 %v375_v24  ;;  %v372_v29 = vld [vmem:[#allocation6 + $0x380] sm:$0xff] }
 0x13e   :  { %692 = vmatpush1.bf16.msra.mxu0 %v540_v32  ;;  %774 = vmatpush1.bf16.msra.mxu1 %v542_v33  ;;  %v612_v32 = vunpack.c.l.s8.bf16 %v372_v29  ;;  %v614_v33 = vunpack.c.l.s8.bf16 %v374_v30 }
 0x13f   :  { %693 = vmatprep.subr.bf16.mxu0 %v549_v34  ;;  %775 = vmatprep.subr.bf16.mxu1 %v551_v35  ;;  %v621_v34 = vunpack.c.h.s8.bf16 %v373_v23  ;;  %v623_v35 = vunpack.c.h.s8.bf16 %v375_v24  ;;  %v280_v24 = vld [vmem:[#allocation6 + $0xa0] sm:$0xff] }
 0x142   :  { %694 = vmatpush1.bf16.msra.mxu0 %v548_v38  ;;  %776 = vmatpush1.bf16.msra.mxu1 %v550_v39  ;;  %v383_v38 = vld [vmem:[#allocation6 + $0x3d8] sm:$0xff]  ;;  %v620_v39 = vunpack.c.h.s8.bf16 %v372_v29 }
 0x143   :  { %695 = vmatprep.subr.bf16.mxu0 %v557_v40  ;;  %777 = vmatprep.subr.bf16.mxu1 %v559_v41  ;;  %v622_v40 = vunpack.c.h.s8.bf16 %v374_v30  ;;  %v629_v41 = vunpack.c.l.s8.bf16 %v381_v37  ;;  %v631_v42 = vunpack.c.l.s8.bf16 %v383_v38  ;;  %v639_v52 = vunpack.c.h.s8.bf16 %v383_v38  ;;  %v288_v37 = vld [vmem:[#allocation6 + $0xe0] sm:$0xff] }
 0x146   :  { %696 = vmatpush1.bf16.msra.mxu0 %v556_v44  ;;  %778 = vmatpush1.bf16.msra.mxu1 %v558_v45  ;;  %v382_v44 = vld [vmem:[#allocation6 + $0x3d0] sm:$0xff]  ;;  %v238_v45 = vadd.f32 %v2200_v0, %v109_v36 }
 0x147   :  { %697 = vmatprep.subr.bf16.mxu0 %v565_v46  ;;  %779 = vmatprep.subr.bf16.mxu1 %v567_v47  ;;  %v628_v46 = vunpack.c.l.s8.bf16 %v380_v43  ;;  %v630_v47 = vunpack.c.l.s8.bf16 %v382_v44 }
 0x148   :  { %v250_v54 = vmul.f32 0.2, %v238_v45  ;;  %vm246_vm4 = vcmp.gt.f32.partialorder %v238_v45, 0.0 }
 0x14a   :  { %698 = vmatpush1.bf16.msra.mxu0 %v564_v55  ;;  %780 = vmatpush1.bf16.msra.mxu1 %v566_v56  ;;  %v265_v55 = vld [vmem:[#allocation6 + $0x28] sm:$0xff]  ;;  %v267_v56 = vld [vmem:[#allocation6 + $0x38] sm:$0xff] }
 0x14b   :  { %699 = vmatprep.subr.bf16.mxu0 %v573_v57  ;;  %781 = vmatprep.subr.bf16.mxu1 %v575_v58  ;;  %v636_v57 = vunpack.c.h.s8.bf16 %v380_v43  ;;  %v638_v58 = vunpack.c.h.s8.bf16 %v382_v44  ;;  %v393_v59 = vunpack.c.l.s8.bf16 %v265_v55  ;;  %v395_v0 = vunpack.c.l.s8.bf16 %v267_v56  ;;  %v297_v44 = vld [vmem:[#allocation6 + $0x128] sm:$0xff] }
 0x14c   :  { %v401_v3 = vunpack.c.h.s8.bf16 %v265_v55  ;;  %v298_v55 = vld [vmem:[#allocation6 + $0x130] sm:$0xff] }
 0x14e   :  { %700 = vmatpush1.bf16.msra.mxu0 %v572_v61  ;;  %782 = vmatpush1.bf16.msra.mxu1 %v574_v62  ;;  %v254_v61 = vsel %vm246_vm4, %v238_v45, %v250_v54  ;;  %v266_v62 = vld [vmem:[#allocation6 + $0x30] sm:$0xff]  ;;  %v299_v45 = vld [vmem:[#allocation6 + $0x138] sm:$0xff] }
 0x14f   :  { %701 = vmatprep.subr.bf16.mxu0 %v581_v63  ;;  %783 = vmatprep.subr.bf16.mxu1 %v583_v1  ;;  %v392_v63 = vunpack.c.l.s8.bf16 %v264_v60  ;;  %v2220_v1 = vpack.c.bf16 %v254_v61, %v254_v61  ;;  %v394_v2 = vunpack.c.l.s8.bf16 %v266_v62  ;;  %v402_v8 = vunpack.c.h.s8.bf16 %v266_v62 }
 0x150   :  { %v459_v54 = vunpack.c.l.s8.bf16 %v299_v45  ;;  %v466_v62 = vunpack.c.h.s8.bf16 %v298_v55 }
 0x152   :  { %702 = vmatpush1.bf16.msra.mxu0 %v580_v4  ;;  %784 = vmatpush1.bf16.msra.mxu1 %v582_v5  ;;  %v403_v4 = vunpack.c.h.s8.bf16 %v267_v56  ;;  %v273_v5 = vld [vmem:[#allocation6 + $0x68] sm:$0xff] }
 0x153   :  { %703 = vmatprep.subr.bf16.mxu0 %v589_v6  ;;  %785 = vmatprep.subr.bf16.mxu1 %v591_v7  ;;  %v275_v6 = vld [vmem:[#allocation6 + $0x78] sm:$0xff]  ;;  %v400_v7 = vunpack.c.h.s8.bf16 %v264_v60  ;;  %v409_v9 = vunpack.c.l.s8.bf16 %v273_v5  ;;  %v417_v17 = vunpack.c.h.s8.bf16 %v273_v5 }
 0x154   :  { %v307_v60 = vld [vmem:[#allocation6 + $0x178] sm:$0xff] }
 0x156   :  { %704 = vmatpush1.bf16.msra.mxu0 %v588_v11  ;;  %786 = vmatpush1.bf16.msra.mxu1 %v590_v12  ;;  %v272_v11 = vld [vmem:[#allocation6 + $0x60] sm:$0xff]  ;;  %v411_v12 = vunpack.c.l.s8.bf16 %v275_v6 }
 0x157   :  { %705 = vmatprep.subr.bf16.mxu0 %v597_v14  ;;  %787 = vmatprep.subr.bf16.mxu1 %v599_v15  ;;  %v274_v14 = vld [vmem:[#allocation6 + $0x70] sm:$0xff]  ;;  %v408_v15 = vunpack.c.l.s8.bf16 %v272_v11 }
 0x158   :  { %v410_v16 = vunpack.c.l.s8.bf16 %v274_v14 }
 0x15a   :  { %706 = vmatpush1.bf16.msra.mxu0 %v596_v18  ;;  %788 = vmatpush1.bf16.msra.mxu1 %v598_v20  ;;  %v419_v18 = vunpack.c.h.s8.bf16 %v275_v6  ;;  %v281_v20 = vld [vmem:[#allocation6 + $0xa8] sm:$0xff] }
 0x15b   :  { %707 = vmatprep.subr.bf16.mxu0 %v605_v21  ;;  %789 = vmatprep.subr.bf16.mxu1 %v607_v22  ;;  %v283_v21 = vld [vmem:[#allocation6 + $0xb8] sm:$0xff]  ;;  %v416_v22 = vunpack.c.h.s8.bf16 %v272_v11  ;;  %v425_v23 = vunpack.c.l.s8.bf16 %v281_v20  ;;  %v433_v29 = vunpack.c.h.s8.bf16 %v281_v20 }
 0x15c   :  { %v435_v30 = vunpack.c.h.s8.bf16 %v283_v21  ;;  %v315_v11 = vld [vmem:[#allocation6 + $0x1b8] sm:$0xff] }
 0x15e   :  { %708 = vmatpush1.bf16.msra.mxu0 %v604_v25  ;;  %790 = vmatpush1.bf16.msra.mxu1 %v606_v26  ;;  %v427_v25 = vunpack.c.l.s8.bf16 %v283_v21  ;;  %v282_v26 = vld [vmem:[#allocation6 + $0xb0] sm:$0xff] }
 0x15f   :  { %709 = vmatprep.subr.bf16.mxu0 %v613_v27  ;;  %791 = vmatprep.subr.bf16.mxu1 %v615_v28  ;;  %v424_v27 = vunpack.c.l.s8.bf16 %v280_v24  ;;  %v426_v28 = vunpack.c.l.s8.bf16 %v282_v26 }
 0x162   :  { %710 = vmatpush1.bf16.msra.mxu0 %v612_v32  ;;  %792 = vmatpush1.bf16.msra.mxu1 %v614_v33  ;;  %v289_v32 = vld [vmem:[#allocation6 + $0xe8] sm:$0xff]  ;;  %v291_v33 = vld [vmem:[#allocation6 + $0xf8] sm:$0xff] }
 0x163   :  { %711 = vmatprep.subr.bf16.mxu0 %v621_v34  ;;  %793 = vmatprep.subr.bf16.mxu1 %v623_v35  ;;  %v432_v34 = vunpack.c.h.s8.bf16 %v280_v24  ;;  %v434_v35 = vunpack.c.h.s8.bf16 %v282_v26  ;;  %v441_v36 = vunpack.c.l.s8.bf16 %v289_v32  ;;  %v443_v38 = vunpack.c.l.s8.bf16 %v291_v33  ;;  %v323_v24 = vld [vmem:[#allocation6 + $0x1f8] sm:$0xff] }
 0x164   :  { %v451_v43 = vunpack.c.h.s8.bf16 %v291_v33 }
 0x166   :  { %712 = vmatpush1.bf16.msra.mxu0 %v620_v39  ;;  %794 = vmatpush1.bf16.msra.mxu1 %v622_v40  ;;  %v290_v39 = vld [vmem:[#allocation6 + $0xf0] sm:$0xff]  ;;  %v440_v40 = vunpack.c.l.s8.bf16 %v288_v37 }
 0x167   :  { %713 = vmatprep.subr.bf16.mxu0 %v629_v41  ;;  %795 = vmatprep.subr.bf16.mxu1 %v631_v42  ;;  %v442_v41 = vunpack.c.l.s8.bf16 %v290_v39  ;;  %v449_v42 = vunpack.c.h.s8.bf16 %v289_v32 }
 0x16a   :  { %714 = vmatpush1.bf16.msra.mxu0 %v628_v46  ;;  %796 = vmatpush1.bf16.msra.mxu1 %v630_v47  ;;  %v448_v46 = vunpack.c.h.s8.bf16 %v288_v37  ;;  %v450_v47 = vunpack.c.h.s8.bf16 %v290_v39  ;;  %v331_v37 = vld [vmem:[#allocation6 + $0x238] sm:$0xff] }
 0x16b   :  { %715 = vmatprep.subr.bf16.mxu0 %v637_v50  ;;  %797 = vmatprep.subr.bf16.mxu1 %v639_v52  ;;  %v457_v50 = vunpack.c.l.s8.bf16 %v297_v44  ;;  %v296_v52 = vld [vmem:[#allocation6 + $0x120] sm:$0xff] }
 0x16c   :  { %v456_v56 = vunpack.c.l.s8.bf16 %v296_v52  ;;  %v464_v61 = vunpack.c.h.s8.bf16 %v296_v52  ;;  %v339_v52 = vld [vmem:[#allocation6 + $0x278] sm:$0xff] }
 0x16e   :  { %716 = vmatpush1.bf16.msra.mxu0 %v636_v57  ;;  %798 = vmatpush1.bf16.msra.mxu1 %v638_v58  ;;  %v458_v57 = vunpack.c.l.s8.bf16 %v298_v55  ;;  %v465_v58 = vunpack.c.h.s8.bf16 %v297_v44 }
 0x16f   :  { %808 = vmatprep.subr.bf16.mxu0 %v393_v59  ;;  %890 = vmatprep.subr.bf16.mxu1 %v395_v0  ;;  %v467_v59 = vunpack.c.h.s8.bf16 %v299_v45  ;;  %v305_v0 = vld [vmem:[#allocation6 + $0x168] sm:$0xff] }
 0x171   :  { %718 = vmatmul.mubr.bf16.vlgmr.msra.gmra.mrb[4].mxu0 %v2220_v1  ;;  %800 = vmatmul.mubr.bf16.vlgmr.msra.gmra.mrb[4].mxu1 %v2220_v1 }
 0x172   :  { %809 = vmatpush1.bf16.msra.mxu0 %v392_v63  ;;  %840 = vmatprep.mubr.bf16.mxu0 %v2202_v10  ;;  %v473_v63 = vunpack.c.l.s8.bf16 %v305_v0 }
 0x173   :  { %891 = vmatpush1.bf16.msra.mxu1 %v394_v2  ;;  %922 = vmatprep.mubr.bf16.mxu1 %v2202_v10  ;;  %v418_v10 = vunpack.c.h.s8.bf16 %v274_v14  ;;  %v304_v2 = vld [vmem:[#allocation6 + $0x160] sm:$0xff] }
 0x174   :  { %810 = vmatprep.subr.bf16.mxu0 %v401_v3  ;;  %892 = vmatprep.subr.bf16.mxu1 %v403_v4  ;;  %v475_v3 = vunpack.c.l.s8.bf16 %v307_v60  ;;  %v306_v4 = vld [vmem:[#allocation6 + $0x170] sm:$0xff]  ;;  %v472_v5 = vunpack.c.l.s8.bf16 %v304_v2 }
 0x175   :  { %v474_v6 = vunpack.c.l.s8.bf16 %v306_v4  ;;  %v482_v14 = vunpack.c.h.s8.bf16 %v306_v4  ;;  %v344_v4 = vld [vmem:[#allocation6 + $0x2a0] sm:$0xff] }
 0x176   :  { %811 = vmatpush1.bf16.msra.mxu0 %v400_v7  ;;  %v481_v7 = vunpack.c.h.s8.bf16 %v305_v0 }
 0x177   :  { %893 = vmatpush1.bf16.msra.mxu1 %v402_v8  ;;  %812 = vmatprep.subr.bf16.mxu0 %v409_v9  ;;  %v483_v8 = vunpack.c.h.s8.bf16 %v307_v60  ;;  %v313_v9 = vld [vmem:[#allocation6 + $0x1a8] sm:$0xff] }
 0x178   :  { %894 = vmatprep.subr.bf16.mxu1 %v411_v12  ;;  %v480_v12 = vunpack.c.h.s8.bf16 %v304_v2 }
 0x17a   :  { %813 = vmatpush1.bf16.msra.mxu0 %v408_v15  ;;  %v489_v15 = vunpack.c.l.s8.bf16 %v313_v9 }
 0x17b   :  { %895 = vmatpush1.bf16.msra.mxu1 %v410_v16  ;;  %814 = vmatprep.subr.bf16.mxu0 %v417_v17  ;;  %v312_v16 = vld [vmem:[#allocation6 + $0x1a0] sm:$0xff]  ;;  %v491_v17 = vunpack.c.l.s8.bf16 %v315_v11 }
 0x17c   :  { %896 = vmatprep.subr.bf16.mxu1 %v419_v18  ;;  %v314_v18 = vld [vmem:[#allocation6 + $0x1b0] sm:$0xff]  ;;  %v488_v20 = vunpack.c.l.s8.bf16 %v312_v16 }
 0x17d   :  { %v490_v21 = vunpack.c.l.s8.bf16 %v314_v18  ;;  %v498_v26 = vunpack.c.h.s8.bf16 %v314_v18  ;;  %v352_v18 = vld [vmem:[#allocation6 + $0x2e0] sm:$0xff] }
 0x17e   :  { %815 = vmatpush1.bf16.msra.mxu0 %v416_v22  ;;  %v497_v22 = vunpack.c.h.s8.bf16 %v313_v9 }
 0x17f   :  { %897 = vmatpush1.bf16.msra.mxu1 %v418_v10  ;;  %816 = vmatprep.subr.bf16.mxu0 %v425_v23  ;;  %v499_v10 = vunpack.c.h.s8.bf16 %v315_v11  ;;  %v321_v23 = vld [vmem:[#allocation6 + $0x1e8] sm:$0xff] }
 0x180   :  { %898 = vmatprep.subr.bf16.mxu1 %v427_v25  ;;  %v496_v25 = vunpack.c.h.s8.bf16 %v312_v16 }
 0x182   :  { %817 = vmatpush1.bf16.msra.mxu0 %v424_v27  ;;  %v505_v27 = vunpack.c.l.s8.bf16 %v321_v23 }
 0x183   :  { %899 = vmatpush1.bf16.msra.mxu1 %v426_v28  ;;  %818 = vmatprep.subr.bf16.mxu0 %v433_v29  ;;  %v320_v28 = vld [vmem:[#allocation6 + $0x1e0] sm:$0xff]  ;;  %v507_v29 = vunpack.c.l.s8.bf16 %v323_v24 }
 0x184   :  { %900 = vmatprep.subr.bf16.mxu1 %v435_v30  ;;  %v322_v30 = vld [vmem:[#allocation6 + $0x1f0] sm:$0xff]  ;;  %v504_v32 = vunpack.c.l.s8.bf16 %v320_v28 }
 0x185   :  { %v506_v33 = vunpack.c.l.s8.bf16 %v322_v30  ;;  %v514_v39 = vunpack.c.h.s8.bf16 %v322_v30  ;;  %v360_v30 = vld [vmem:[#allocation6 + $0x320] sm:$0xff] }
 0x186   :  { %819 = vmatpush1.bf16.msra.mxu0 %v432_v34  ;;  %v513_v34 = vunpack.c.h.s8.bf16 %v321_v23 }
 0x187   :  { %901 = vmatpush1.bf16.msra.mxu1 %v434_v35  ;;  %820 = vmatprep.subr.bf16.mxu0 %v441_v36  ;;  %v515_v35 = vunpack.c.h.s8.bf16 %v323_v24  ;;  %v329_v36 = vld [vmem:[#allocation6 + $0x228] sm:$0xff] }
 0x188   :  { %902 = vmatprep.subr.bf16.mxu1 %v443_v38  ;;  %v512_v38 = vunpack.c.h.s8.bf16 %v320_v28 }
 0x18a   :  { %821 = vmatpush1.bf16.msra.mxu0 %v440_v40  ;;  %v521_v40 = vunpack.c.l.s8.bf16 %v329_v36 }
 0x18b   :  { %903 = vmatpush1.bf16.msra.mxu1 %v442_v41  ;;  %822 = vmatprep.subr.bf16.mxu0 %v449_v42  ;;  %v328_v41 = vld [vmem:[#allocation6 + $0x220] sm:$0xff]  ;;  %v523_v42 = vunpack.c.l.s8.bf16 %v331_v37 }
 0x18c   :  { %904 = vmatprep.subr.bf16.mxu1 %v451_v43  ;;  %v330_v43 = vld [vmem:[#allocation6 + $0x230] sm:$0xff]  ;;  %v520_v44 = vunpack.c.l.s8.bf16 %v328_v41 }
 0x18d   :  { %v522_v45 = vunpack.c.l.s8.bf16 %v330_v43  ;;  %v530_v55 = vunpack.c.h.s8.bf16 %v330_v43  ;;  %v368_v43 = vld [vmem:[#allocation6 + $0x360] sm:$0xff] }
 0x18e   :  { %823 = vmatpush1.bf16.msra.mxu0 %v448_v46  ;;  %v529_v46 = vunpack.c.h.s8.bf16 %v329_v36 }
 0x18f   :  { %905 = vmatpush1.bf16.msra.mxu1 %v450_v47  ;;  %824 = vmatprep.subr.bf16.mxu0 %v457_v50  ;;  %v337_v47 = vld [vmem:[#allocation6 + $0x268] sm:$0xff]  ;;  %v531_v50 = vunpack.c.h.s8.bf16 %v331_v37 }
 0x190   :  { %906 = vmatprep.subr.bf16.mxu1 %v459_v54  ;;  %v528_v54 = vunpack.c.h.s8.bf16 %v328_v41 }
 0x192   :  { %825 = vmatpush1.bf16.msra.mxu0 %v456_v56  ;;  %v537_v56 = vunpack.c.l.s8.bf16 %v337_v47 }
 0x193   :  { %907 = vmatpush1.bf16.msra.mxu1 %v458_v57  ;;  %826 = vmatprep.subr.bf16.mxu0 %v465_v58  ;;  %v336_v57 = vld [vmem:[#allocation6 + $0x260] sm:$0xff]  ;;  %v539_v58 = vunpack.c.l.s8.bf16 %v339_v52 }
 0x194   :  { %908 = vmatprep.subr.bf16.mxu1 %v467_v59  ;;  %v338_v59 = vld [vmem:[#allocation6 + $0x270] sm:$0xff]  ;;  %v536_v0 = vunpack.c.l.s8.bf16 %v336_v57  ;;  %v544_v2 = vunpack.c.h.s8.bf16 %v336_v57 }
 0x195   :  { %v538_v60 = vunpack.c.l.s8.bf16 %v338_v59 }
 0x196   :  { %827 = vmatpush1.bf16.msra.mxu0 %v464_v61  ;;  %v547_v61 = vunpack.c.h.s8.bf16 %v339_v52 }
 0x197   :  { %909 = vmatpush1.bf16.msra.mxu1 %v466_v62  ;;  %828 = vmatprep.subr.bf16.mxu0 %v473_v63  ;;  %v345_v62 = vld [vmem:[#allocation6 + $0x2a8] sm:$0xff]  ;;  %v347_v63 = vld [vmem:[#allocation6 + $0x2b8] sm:$0xff] }
 0x198   :  { %910 = vmatprep.subr.bf16.mxu1 %v475_v3  ;;  %v546_v3 = vunpack.c.h.s8.bf16 %v338_v59  ;;  %v561_v9 = vunpack.c.h.s8.bf16 %v345_v62  ;;  %v563_v11 = vunpack.c.h.s8.bf16 %v347_v63  ;;  %v376_v59 = vld [vmem:[#allocation6 + $0x3a0] sm:$0xff] }
 0x19a   :  { %829 = vmatpush1.bf16.msra.mxu0 %v472_v5  ;;  %v555_v5 = vunpack.c.l.s8.bf16 %v347_v63 }
 0x19b   :  { %911 = vmatpush1.bf16.msra.mxu1 %v474_v6  ;;  %830 = vmatprep.subr.bf16.mxu0 %v481_v7  ;;  %v346_v6 = vld [vmem:[#allocation6 + $0x2b0] sm:$0xff]  ;;  %v552_v7 = vunpack.c.l.s8.bf16 %v344_v4 }
 0x19c   :  { %912 = vmatprep.subr.bf16.mxu1 %v483_v8  ;;  %v554_v8 = vunpack.c.l.s8.bf16 %v346_v6  ;;  %v562_v16 = vunpack.c.h.s8.bf16 %v346_v6  ;;  %v384_v6 = vld [vmem:[#allocation6 + $0x3e0] sm:$0xff] }
 0x19e   :  { %831 = vmatpush1.bf16.msra.mxu0 %v480_v12  ;;  %v353_v12 = vld [vmem:[#allocation6 + $0x2e8] sm:$0xff] }
 0x19f   :  { %913 = vmatpush1.bf16.msra.mxu1 %v482_v14  ;;  %832 = vmatprep.subr.bf16.mxu0 %v489_v15  ;;  %v355_v14 = vld [vmem:[#allocation6 + $0x2f8] sm:$0xff]  ;;  %v560_v15 = vunpack.c.h.s8.bf16 %v344_v4  ;;  %v577_v23 = vunpack.c.h.s8.bf16 %v353_v12 }
 0x1a0   :  { %914 = vmatprep.subr.bf16.mxu1 %v491_v17  ;;  %v569_v17 = vunpack.c.l.s8.bf16 %v353_v12  ;;  %v579_v24 = vunpack.c.h.s8.bf16 %v355_v14 }
 0x1a2   :  { %833 = vmatpush1.bf16.msra.mxu0 %v488_v20  ;;  %v571_v20 = vunpack.c.l.s8.bf16 %v355_v14 }
 0x1a3   :  { %915 = vmatpush1.bf16.msra.mxu1 %v490_v21  ;;  %834 = vmatprep.subr.bf16.mxu0 %v497_v22  ;;  %v354_v21 = vld [vmem:[#allocation6 + $0x2f0] sm:$0xff]  ;;  %v568_v22 = vunpack.c.l.s8.bf16 %v352_v18 }
 0x1a4   :  { %916 = vmatprep.subr.bf16.mxu1 %v499_v10  ;;  %v570_v10 = vunpack.c.l.s8.bf16 %v354_v21  ;;  %v578_v28 = vunpack.c.h.s8.bf16 %v354_v21  ;;  %v1104_v21 = vld [vmem:[#allocation7] sm:$0xff] }
 0x1a6   :  { %835 = vmatpush1.bf16.msra.mxu0 %v496_v25  ;;  %v361_v25 = vld [vmem:[#allocation6 + $0x328] sm:$0xff] }
 0x1a7   :  { %917 = vmatpush1.bf16.msra.mxu1 %v498_v26  ;;  %836 = vmatprep.subr.bf16.mxu0 %v505_v27  ;;  %v363_v26 = vld [vmem:[#allocation6 + $0x338] sm:$0xff]  ;;  %v576_v27 = vunpack.c.h.s8.bf16 %v352_v18  ;;  %v593_v36 = vunpack.c.h.s8.bf16 %v361_v25 }
 0x1a8   :  { %918 = vmatprep.subr.bf16.mxu1 %v507_v29  ;;  %v585_v29 = vunpack.c.l.s8.bf16 %v361_v25  ;;  %v595_v37 = vunpack.c.h.s8.bf16 %v363_v26 }
 0x1aa   :  { %837 = vmatpush1.bf16.msra.mxu0 %v504_v32  ;;  %v587_v32 = vunpack.c.l.s8.bf16 %v363_v26 }
 0x1ab   :  { %919 = vmatpush1.bf16.msra.mxu1 %v506_v33  ;;  %838 = vmatprep.subr.bf16.mxu0 %v513_v34  ;;  %v362_v33 = vld [vmem:[#allocation6 + $0x330] sm:$0xff]  ;;  %v584_v34 = vunpack.c.l.s8.bf16 %v360_v30 }
 0x1ac   :  { %920 = vmatprep.subr.bf16.mxu1 %v515_v35  ;;  %v586_v35 = vunpack.c.l.s8.bf16 %v362_v33  ;;  %v594_v41 = vunpack.c.h.s8.bf16 %v362_v33  ;;  %v1108_v33 = vld [vmem:[#allocation7 + $0x20] sm:$0xff] }
 0x1ae   :  { %839 = vmatpush1.bf16.msra.mxu0 %v512_v38  ;;  %v369_v38 = vld [vmem:[#allocation6 + $0x368] sm:$0xff] }
 0x1af   :  { %921 = vmatpush1.bf16.msra.mxu1 %v514_v39  ;;  %849 = vmatprep.subr.bf16.mxu0 %v521_v40  ;;  %v371_v39 = vld [vmem:[#allocation6 + $0x378] sm:$0xff]  ;;  %v592_v40 = vunpack.c.h.s8.bf16 %v360_v30 }
 0x1b0   :  { %931 = vmatprep.subr.bf16.mxu1 %v523_v42  ;;  %v601_v42 = vunpack.c.l.s8.bf16 %v369_v38  ;;  %v611_v52 = vunpack.c.h.s8.bf16 %v371_v39 }
 0x1b1   :  { %841 = vmatmul.mubr.bf16.vlgmr.msra.gmra.mrb[8].mxu0 %v2204_v13 }
 0x1b2   :  { %923 = vmatmul.mubr.bf16.vlgmr.msra.gmra.mrb[8].mxu1 %v2204_v13  ;;  %850 = vmatpush1.bf16.msra.mxu0 %v520_v44  ;;  %v545_v13 = vunpack.c.h.s8.bf16 %v337_v47  ;;  %v603_v44 = vunpack.c.l.s8.bf16 %v371_v39 }
 0x1b3   :  { %881 = vmatprep.mubr.bf16.mxu0 %v2210_v19  ;;  %932 = vmatpush1.bf16.msra.mxu1 %v522_v45  ;;  %v370_v45 = vld [vmem:[#allocation6 + $0x370] sm:$0xff] }
 0x1b4   :  { %963 = vmatprep.mubr.bf16.mxu1 %v2210_v19  ;;  %851 = vmatprep.subr.bf16.mxu0 %v529_v46  ;;  %v553_v19 = vunpack.c.l.s8.bf16 %v345_v62  ;;  %v600_v46 = vunpack.c.l.s8.bf16 %v368_v43  ;;  %v602_v47 = vunpack.c.l.s8.bf16 %v370_v45  ;;  %v610_v57 = vunpack.c.h.s8.bf16 %v370_v45 }
 0x1b5   :  { %933 = vmatprep.subr.bf16.mxu1 %v531_v50  ;;  %v609_v50 = vunpack.c.h.s8.bf16 %v369_v38 }
 0x1b6   :  { %852 = vmatpush1.bf16.msra.mxu0 %v528_v54  ;;  %v377_v54 = vld [vmem:[#allocation6 + $0x3a8] sm:$0xff] }
 0x1b7   :  { %934 = vmatpush1.bf16.msra.mxu1 %v530_v55  ;;  %853 = vmatprep.subr.bf16.mxu0 %v537_v56  ;;  %v379_v55 = vld [vmem:[#allocation6 + $0x3b8] sm:$0xff]  ;;  %v608_v56 = vunpack.c.h.s8.bf16 %v368_v43  ;;  %v625_v62 = vunpack.c.h.s8.bf16 %v377_v54 }
 0x1b8   :  { %935 = vmatprep.subr.bf16.mxu1 %v539_v58  ;;  %v617_v58 = vunpack.c.l.s8.bf16 %v377_v54  ;;  %v627_v63 = vunpack.c.h.s8.bf16 %v379_v55 }
 0x1ba   :  { %854 = vmatpush1.bf16.msra.mxu0 %v536_v0  ;;  %v619_v0 = vunpack.c.l.s8.bf16 %v379_v55  ;;  %v1117_v55 = vld [vmem:[#allocation7 + $0x68] sm:$0xff] }
 0x1bb   :  { %936 = vmatpush1.bf16.msra.mxu1 %v538_v60  ;;  %855 = vmatprep.subr.bf16.mxu0 %v545_v13  ;;  %v378_v60 = vld [vmem:[#allocation6 + $0x3b0] sm:$0xff]  ;;  %v616_v13 = vunpack.c.l.s8.bf16 %v376_v59 }
 0x1bc   :  { %937 = vmatprep.subr.bf16.mxu1 %v547_v61  ;;  %v618_v61 = vunpack.c.l.s8.bf16 %v378_v60  ;;  %v626_v4 = vunpack.c.h.s8.bf16 %v378_v60 }
 0x1be   :  { %856 = vmatpush1.bf16.msra.mxu0 %v544_v2  ;;  %v385_v2 = vld [vmem:[#allocation6 + $0x3e8] sm:$0xff] }
 0x1bf   :  { %938 = vmatpush1.bf16.msra.mxu1 %v546_v3  ;;  %857 = vmatprep.subr.bf16.mxu0 %v553_v19  ;;  %v387_v3 = vld [vmem:[#allocation6 + $0x3f8] sm:$0xff]  ;;  %v624_v19 = vunpack.c.h.s8.bf16 %v376_v59  ;;  %v641_v12 = vunpack.c.h.s8.bf16 %v385_v2  ;;  %v1257_v59 = vunpack.c.l.s8.bf16 %v1117_v55 }
 0x1c0   :  { %939 = vmatprep.subr.bf16.mxu1 %v555_v5  ;;  %v633_v5 = vunpack.c.l.s8.bf16 %v385_v2  ;;  %v643_v14 = vunpack.c.h.s8.bf16 %v387_v3 }
 0x1c2   :  { %858 = vmatpush1.bf16.msra.mxu0 %v552_v7  ;;  %v635_v7 = vunpack.c.l.s8.bf16 %v387_v3  ;;  %v1121_v3 = vld [vmem:[#allocation7 + $0x88] sm:$0xff] }
 0x1c3   :  { %940 = vmatpush1.bf16.msra.mxu1 %v554_v8  ;;  %859 = vmatprep.subr.bf16.mxu0 %v561_v9  ;;  %v386_v8 = vld [vmem:[#allocation6 + $0x3f0] sm:$0xff]  ;;  %v632_v9 = vunpack.c.l.s8.bf16 %v384_v6 }
 0x1c4   :  { %941 = vmatprep.subr.bf16.mxu1 %v563_v11  ;;  %v634_v11 = vunpack.c.l.s8.bf16 %v386_v8  ;;  %v642_v18 = vunpack.c.h.s8.bf16 %v386_v8 }
 0x1c6   :  { %860 = vmatpush1.bf16.msra.mxu0 %v560_v15  ;;  %v1105_v15 = vld [vmem:[#allocation7 + $0x8] sm:$0xff] }
 0x1c7   :  { %942 = vmatpush1.bf16.msra.mxu1 %v562_v16  ;;  %861 = vmatprep.subr.bf16.mxu0 %v569_v17  ;;  %v1107_v16 = vld [vmem:[#allocation7 + $0x18] sm:$0xff]  ;;  %v640_v17 = vunpack.c.h.s8.bf16 %v384_v6  ;;  %v1237_v25 = vunpack.c.h.s8.bf16 %v1105_v15  ;;  %v1265_v6 = vunpack.c.l.s8.bf16 %v1121_v3 }
 0x1c8   :  { %943 = vmatprep.subr.bf16.mxu1 %v571_v20  ;;  %v1233_v20 = vunpack.c.l.s8.bf16 %v1105_v15  ;;  %v1239_v26 = vunpack.c.h.s8.bf16 %v1107_v16 }
 0x1ca   :  { %862 = vmatpush1.bf16.msra.mxu0 %v568_v22  ;;  %v1235_v22 = vunpack.c.l.s8.bf16 %v1107_v16  ;;  %v1125_v16 = vld [vmem:[#allocation7 + $0xa8] sm:$0xff] }
 0x1cb   :  { %944 = vmatpush1.bf16.msra.mxu1 %v570_v10  ;;  %863 = vmatprep.subr.bf16.mxu0 %v577_v23  ;;  %v1106_v10 = vld [vmem:[#allocation7 + $0x10] sm:$0xff]  ;;  %v1232_v23 = vunpack.c.l.s8.bf16 %v1104_v21 }
 0x1cc   :  { %945 = vmatprep.subr.bf16.mxu1 %v579_v24  ;;  %v1234_v24 = vunpack.c.l.s8.bf16 %v1106_v10  ;;  %v1238_v30 = vunpack.c.h.s8.bf16 %v1106_v10 }
 0x1ce   :  { %864 = vmatpush1.bf16.msra.mxu0 %v576_v27  ;;  %v1109_v27 = vld [vmem:[#allocation7 + $0x28] sm:$0xff] }
 0x1cf   :  { %946 = vmatpush1.bf16.msra.mxu1 %v578_v28  ;;  %865 = vmatprep.subr.bf16.mxu0 %v585_v29  ;;  %v1111_v28 = vld [vmem:[#allocation7 + $0x38] sm:$0xff]  ;;  %v1236_v29 = vunpack.c.h.s8.bf16 %v1104_v21  ;;  %v1245_v38 = vunpack.c.h.s8.bf16 %v1109_v27  ;;  %v1273_v21 = vunpack.c.l.s8.bf16 %v1125_v16 }
 0x1d0   :  { %947 = vmatprep.subr.bf16.mxu1 %v587_v32  ;;  %v1241_v32 = vunpack.c.l.s8.bf16 %v1109_v27  ;;  %v1247_v39 = vunpack.c.h.s8.bf16 %v1111_v28 }
 0x1d2   :  { %866 = vmatpush1.bf16.msra.mxu0 %v584_v34  ;;  %v1243_v34 = vunpack.c.l.s8.bf16 %v1111_v28  ;;  %v1129_v28 = vld [vmem:[#allocation7 + $0xc8] sm:$0xff] }
 0x1d3   :  { %948 = vmatpush1.bf16.msra.mxu1 %v586_v35  ;;  %867 = vmatprep.subr.bf16.mxu0 %v593_v36  ;;  %v1110_v35 = vld [vmem:[#allocation7 + $0x30] sm:$0xff]  ;;  %v1240_v36 = vunpack.c.l.s8.bf16 %v1108_v33 }
 0x1d4   :  { %949 = vmatprep.subr.bf16.mxu1 %v595_v37  ;;  %v1242_v37 = vunpack.c.l.s8.bf16 %v1110_v35 }
 0x1d6   :  { %868 = vmatpush1.bf16.msra.mxu0 %v592_v40  ;;  %v1113_v40 = vld [vmem:[#allocation7 + $0x48] sm:$0xff] }
 0x1d7   :  { %950 = vmatpush1.bf16.msra.mxu1 %v594_v41  ;;  %869 = vmatprep.subr.bf16.mxu0 %v601_v42  ;;  %v1244_v41 = vunpack.c.h.s8.bf16 %v1108_v33  ;;  %v1246_v42 = vunpack.c.h.s8.bf16 %v1110_v35  ;;  %v1249_v43 = vunpack.c.l.s8.bf16 %v1113_v40  ;;  %v1281_v33 = vunpack.c.l.s8.bf16 %v1129_v28 }
 0x1d8   :  { %951 = vmatprep.subr.bf16.mxu1 %v603_v44  ;;  %v1112_v44 = vld [vmem:[#allocation7 + $0x40] sm:$0xff] }
 0x1da   :  { %870 = vmatpush1.bf16.msra.mxu0 %v600_v46  ;;  %v1114_v46 = vld [vmem:[#allocation7 + $0x50] sm:$0xff] }
 0x1db   :  { %952 = vmatpush1.bf16.msra.mxu1 %v602_v47  ;;  %871 = vmatprep.subr.bf16.mxu0 %v609_v50  ;;  %v1248_v47 = vunpack.c.l.s8.bf16 %v1112_v44  ;;  %v1250_v50 = vunpack.c.l.s8.bf16 %v1114_v46 }
 0x1dc   :  { %953 = vmatprep.subr.bf16.mxu1 %v611_v52  ;;  %v1253_v52 = vunpack.c.h.s8.bf16 %v1113_v40 }
 0x1de   :  { %872 = vmatpush1.bf16.msra.mxu0 %v608_v56  ;;  %v1119_v56 = vld [vmem:[#allocation7 + $0x78] sm:$0xff] }
 0x1df   :  { %954 = vmatpush1.bf16.msra.mxu1 %v610_v57  ;;  %873 = vmatprep.subr.bf16.mxu0 %v617_v58  ;;  %v1252_v57 = vunpack.c.h.s8.bf16 %v1112_v44  ;;  %v1254_v58 = vunpack.c.h.s8.bf16 %v1114_v46  ;;  %v1259_v60 = vunpack.c.l.s8.bf16 %v1119_v56  ;;  %v1263_v2 = vunpack.c.h.s8.bf16 %v1119_v56  ;;  %v2232_v56 = vld [vmem:[#allocation7 + $0x108] sm:$0xff] }
 0x1e0   :  { %955 = vmatprep.subr.bf16.mxu1 %v619_v0  ;;  %v1116_v0 = vld [vmem:[#allocation7 + $0x60] sm:$0xff] }
 0x1e2   :  { %874 = vmatpush1.bf16.msra.mxu0 %v616_v13  ;;  %v1118_v13 = vld [vmem:[#allocation7 + $0x70] sm:$0xff] }
 0x1e3   :  { %956 = vmatpush1.bf16.msra.mxu1 %v618_v61  ;;  %875 = vmatprep.subr.bf16.mxu0 %v625_v62  ;;  %v1256_v61 = vunpack.c.l.s8.bf16 %v1116_v0  ;;  %v1258_v62 = vunpack.c.l.s8.bf16 %v1118_v13 }
 0x1e4   :  { %957 = vmatprep.subr.bf16.mxu1 %v627_v63  ;;  %v1261_v63 = vunpack.c.h.s8.bf16 %v1117_v55 }
 0x1e6   :  { %876 = vmatpush1.bf16.msra.mxu0 %v624_v19  ;;  %v1123_v19 = vld [vmem:[#allocation7 + $0x98] sm:$0xff] }
 0x1e7   :  { %958 = vmatpush1.bf16.msra.mxu1 %v626_v4  ;;  %877 = vmatprep.subr.bf16.mxu0 %v633_v5  ;;  %v1260_v4 = vunpack.c.h.s8.bf16 %v1116_v0  ;;  %v1262_v5 = vunpack.c.h.s8.bf16 %v1118_v13  ;;  %v1267_v8 = vunpack.c.l.s8.bf16 %v1123_v19  ;;  %v1271_v15 = vunpack.c.h.s8.bf16 %v1123_v19  ;;  %v2241_v13 = vld [vmem:[%s2318_s4] sm:$0xff] }
 0x1e8   :  { %959 = vmatprep.subr.bf16.mxu1 %v635_v7  ;;  %v1120_v7 = vld [vmem:[#allocation7 + $0x80] sm:$0xff]  ;;  %v1297_v0 = vunpack.c.l.s8.bf16 %v2232_v56 }
 0x1ea   :  { %878 = vmatpush1.bf16.msra.mxu0 %v632_v9  ;;  %v1122_v9 = vld [vmem:[#allocation7 + $0x90] sm:$0xff] }
 0x1eb   :  { %960 = vmatpush1.bf16.msra.mxu1 %v634_v11  ;;  %879 = vmatprep.subr.bf16.mxu0 %v641_v12  ;;  %v1264_v11 = vunpack.c.l.s8.bf16 %v1120_v7  ;;  %v1266_v12 = vunpack.c.l.s8.bf16 %v1122_v9 }
 0x1ec   :  { %961 = vmatprep.subr.bf16.mxu1 %v643_v14  ;;  %v1269_v14 = vunpack.c.h.s8.bf16 %v1121_v3 }
 0x1ee   :  { %880 = vmatpush1.bf16.msra.mxu0 %v640_v17  ;;  %v1127_v17 = vld [vmem:[#allocation7 + $0xb8] sm:$0xff] }
 0x1ef   :  { %962 = vmatpush1.bf16.msra.mxu1 %v642_v18  ;;  %1488 = vmatprep.subr.bf16.mxu0 %v1233_v20  ;;  %v1268_v18 = vunpack.c.h.s8.bf16 %v1120_v7  ;;  %v1270_v20 = vunpack.c.h.s8.bf16 %v1122_v9  ;;  %v1275_v10 = vunpack.c.l.s8.bf16 %v1127_v17  ;;  %v1279_v27 = vunpack.c.h.s8.bf16 %v1127_v17 }
 0x1f0   :  { %1652 = vmatprep.subr.bf16.mxu1 %v1235_v22  ;;  %v1124_v22 = vld [vmem:[#allocation7 + $0xa0] sm:$0xff] }
 0x1f1   :  { %882 = vmatmul.mubr.bf16.vlgmr.msra.gmra.mrb[8].mxu0 %v2220_v1 }
 0x1f2   :  { %964 = vmatmul.mubr.bf16.vlgmr.msra.gmra.mrb[8].mxu1 %v2220_v1  ;;  %1489 = vmatpush1.bf16.msra.mxu0 %v1232_v23  ;;  %v1115_v1 = vld [vmem:[#allocation7 + $0x58] sm:$0xff]  ;;  %v1126_v23 = vld [vmem:[#allocation7 + $0xb0] sm:$0xff] }
 0x1f3   :  { %1653 = vmatpush1.bf16.msra.mxu1 %v1234_v24  ;;  %1490 = vmatprep.subr.bf16.mxu0 %v1237_v25  ;;  %v1251_v45 = vunpack.c.l.s8.bf16 %v1115_v1  ;;  %v1255_v54 = vunpack.c.h.s8.bf16 %v1115_v1  ;;  %v1272_v24 = vunpack.c.l.s8.bf16 %v1124_v22  ;;  %v1274_v25 = vunpack.c.l.s8.bf16 %v1126_v23  ;;  %v1133_v1 = vld [vmem:[#allocation7 + $0xe8] sm:$0xff] }
 0x1f4   :  { %1654 = vmatprep.subr.bf16.mxu1 %v1239_v26  ;;  %v1277_v26 = vunpack.c.h.s8.bf16 %v1125_v16  ;;  %v1289_v44 = vunpack.c.l.s8.bf16 %v1133_v1 }
 0x1f6   :  { %1491 = vmatpush1.bf16.msra.mxu0 %v1236_v29  ;;  %v1131_v29 = vld [vmem:[#allocation7 + $0xd8] sm:$0xff] }
 0x1f7   :  { %1655 = vmatpush1.bf16.msra.mxu1 %v1238_v30  ;;  %1492 = vmatprep.subr.bf16.mxu0 %v1241_v32  ;;  %v1276_v30 = vunpack.c.h.s8.bf16 %v1124_v22  ;;  %v1278_v32 = vunpack.c.h.s8.bf16 %v1126_v23  ;;  %v1283_v35 = vunpack.c.l.s8.bf16 %v1131_v29  ;;  %v1287_v40 = vunpack.c.h.s8.bf16 %v1131_v29  ;;  %v1138_v23 = vld [vmem:[#allocation7 + $0x110] sm:$0xff] }
 0x1f8   :  { %1656 = vmatprep.subr.bf16.mxu1 %v1243_v34  ;;  %v1128_v34 = vld [vmem:[#allocation7 + $0xc0] sm:$0xff] }
 0x1fa   :  { %1493 = vmatpush1.bf16.msra.mxu0 %v1240_v36  ;;  %v1130_v36 = vld [vmem:[#allocation7 + $0xd0] sm:$0xff] }
 0x1fb   :  { %1657 = vmatpush1.bf16.msra.mxu1 %v1242_v37  ;;  %1494 = vmatprep.subr.bf16.mxu0 %v1245_v38  ;;  %v1280_v37 = vunpack.c.l.s8.bf16 %v1128_v34  ;;  %v1282_v38 = vunpack.c.l.s8.bf16 %v1130_v36 }
 0x1fc   :  { %1658 = vmatprep.subr.bf16.mxu1 %v1247_v39  ;;  %v1285_v39 = vunpack.c.h.s8.bf16 %v1129_v28 }
 0x1fe   :  { %1495 = vmatpush1.bf16.msra.mxu0 %v1244_v41  ;;  %v1135_v41 = vld [vmem:[#allocation7 + $0xf8] sm:$0xff] }
 0x1ff   :  { %1659 = vmatpush1.bf16.msra.mxu1 %v1246_v42  ;;  %1496 = vmatprep.subr.bf16.mxu0 %v1249_v43  ;;  %v1284_v42 = vunpack.c.h.s8.bf16 %v1128_v34  ;;  %v1286_v43 = vunpack.c.h.s8.bf16 %v1130_v36  ;;  %v1291_v46 = vunpack.c.l.s8.bf16 %v1135_v41  ;;  %v1295_v55 = vunpack.c.h.s8.bf16 %v1135_v41  ;;  %v1141_v36 = vld [vmem:[#allocation7 + $0x128] sm:$0xff] }
 0x200   :  { %1660 = vmatprep.subr.bf16.mxu1 %v1251_v45  ;;  %v1132_v45 = vld [vmem:[#allocation7 + $0xe0] sm:$0xff]  ;;  %v1301_v34 = vunpack.c.h.s8.bf16 %v2232_v56 }
 0x202   :  { %1497 = vmatpush1.bf16.msra.mxu0 %v1248_v47  ;;  %v1134_v47 = vld [vmem:[#allocation7 + $0xf0] sm:$0xff] }
 0x203   :  { %1661 = vmatpush1.bf16.msra.mxu1 %v1250_v50  ;;  %1498 = vmatprep.subr.bf16.mxu0 %v1253_v52  ;;  %v1288_v50 = vunpack.c.l.s8.bf16 %v1132_v45  ;;  %v1290_v52 = vunpack.c.l.s8.bf16 %v1134_v47 }
 0x204   :  { %1662 = vmatprep.subr.bf16.mxu1 %v1255_v54  ;;  %v1293_v54 = vunpack.c.h.s8.bf16 %v1133_v1  ;;  %v1305_v1 = vunpack.c.l.s8.bf16 %v1141_v36 }
 0x206   :  { %1499 = vmatpush1.bf16.msra.mxu0 %v1252_v57  ;;  %v2234_v57 = vld [vmem:[#allocation7 + $0x118] sm:$0xff] }
 0x207   :  { %1663 = vmatpush1.bf16.msra.mxu1 %v1254_v58  ;;  %1500 = vmatprep.subr.bf16.mxu0 %v1257_v59  ;;  %v1292_v58 = vunpack.c.h.s8.bf16 %v1132_v45  ;;  %v1294_v59 = vunpack.c.h.s8.bf16 %v1134_v47 }
 0x208   :  { %1664 = vmatprep.subr.bf16.mxu1 %v1259_v60  ;;  %v1299_v60 = vunpack.c.l.s8.bf16 %v2234_v57 }
 0x20a   :  { %1501 = vmatpush1.bf16.msra.mxu0 %v1256_v61  ;;  %v2246_v61 = vld [vmem:[%s2319_s5] sm:$0xff] }
 0x20b   :  { %1665 = vmatpush1.bf16.msra.mxu1 %v1258_v62  ;;  %1502 = vmatprep.subr.bf16.mxu0 %v1261_v63  ;;  %v977_v62 = vrot.slane %v2241_v13, %v2184_v49  ;;  %v981_v63 = vrot.slane %v2241_v13, %v2189_v51  ;;  %v1027_v3 = vrot.slane %v2246_v61, %v2184_v49 }
 0x20c   :  { %1666 = vmatprep.subr.bf16.mxu1 %v1263_v2  ;;  %v989_v2 = vrot.slane %v2241_v13, %v2194_v53 }
 0x20e   :  { %1503 = vmatpush1.bf16.msra.mxu0 %v1260_v4 }
 0x20f   :  { %1667 = vmatpush1.bf16.msra.mxu1 %v1262_v5  ;;  %1504 = vmatprep.subr.bf16.mxu0 %v1265_v6  ;;  %v1031_v5 = vrot.slane %v2246_v61, %v2189_v51  ;;  %v1039_v6 = vrot.slane %v2246_v61, %v2194_v53 }
 0x210   :  { %1668 = vmatprep.subr.bf16.mxu1 %v1267_v8 }
 0x212   :  { %1505 = vmatpush1.bf16.msra.mxu0 %v1264_v11 }
 0x213   :  { %1669 = vmatpush1.bf16.msra.mxu1 %v1266_v12  ;;  %1506 = vmatprep.subr.bf16.mxu0 %v1269_v14 }
 0x214   :  { %1670 = vmatprep.subr.bf16.mxu1 %v1271_v15 }
 0x216   :  { %1507 = vmatpush1.bf16.msra.mxu0 %v1268_v18 }
 0x217   :  { %1671 = vmatpush1.bf16.msra.mxu1 %v1270_v20  ;;  %1508 = vmatprep.subr.bf16.mxu0 %v1273_v21 }
 0x218   :  { %1672 = vmatprep.subr.bf16.mxu1 %v1275_v10  ;;  %v1136_v10 = vld [vmem:[#allocation7 + $0x100] sm:$0xff] }
 0x219   :  { %v1296_v29 = vunpack.c.l.s8.bf16 %v1136_v10 }
 0x21a   :  { %1509 = vmatpush1.bf16.msra.mxu0 %v1272_v24 }
 0x21b   :  { %1673 = vmatpush1.bf16.msra.mxu1 %v1274_v25  ;;  %1510 = vmatprep.subr.bf16.mxu0 %v1277_v26 }
 0x21c   :  { %1674 = vmatprep.subr.bf16.mxu1 %v1279_v27 }
 0x21e   :  { %1511 = vmatpush1.bf16.msra.mxu0 %v1276_v30  ;;  %v1298_v30 = vunpack.c.l.s8.bf16 %v1138_v23 }
 0x21f   :  { %1675 = vmatpush1.bf16.msra.mxu1 %v1278_v32  ;;  %1512 = vmatprep.subr.bf16.mxu0 %v1281_v33 }
 0x220   :  { %1676 = vmatprep.subr.bf16.mxu1 %v1283_v35  ;;  %v1303_v35 = vunpack.c.h.s8.bf16 %v2234_v57 }
 0x222   :  { %1513 = vmatpush1.bf16.msra.mxu0 %v1280_v37  ;;  %v1143_v37 = vld [vmem:[#allocation7 + $0x138] sm:$0xff] }
 0x223   :  { %1677 = vmatpush1.bf16.msra.mxu1 %v1282_v38  ;;  %1514 = vmatprep.subr.bf16.mxu0 %v1285_v39  ;;  %v1300_v39 = vunpack.c.h.s8.bf16 %v1136_v10  ;;  %v1307_v41 = vunpack.c.l.s8.bf16 %v1143_v37  ;;  %v1311_v47 = vunpack.c.h.s8.bf16 %v1143_v37  ;;  %v1152_v10 = vld [vmem:[#allocation7 + $0x180] sm:$0xff] }
 0x224   :  { %1678 = vmatprep.subr.bf16.mxu1 %v1287_v40  ;;  %v1302_v40 = vunpack.c.h.s8.bf16 %v1138_v23  ;;  %v1154_v23 = vld [vmem:[#allocation7 + $0x190] sm:$0xff] }
 0x226   :  { %1515 = vmatpush1.bf16.msra.mxu0 %v1284_v42  ;;  %v1140_v42 = vld [vmem:[#allocation7 + $0x120] sm:$0xff] }
 0x227   :  { %1679 = vmatpush1.bf16.msra.mxu1 %v1286_v43  ;;  %1516 = vmatprep.subr.bf16.mxu0 %v1289_v44  ;;  %v1142_v43 = vld [vmem:[#allocation7 + $0x130] sm:$0xff]  ;;  %v1304_v44 = vunpack.c.l.s8.bf16 %v1140_v42 }
 0x228   :  { %1680 = vmatprep.subr.bf16.mxu1 %v1291_v46  ;;  %v1306_v45 = vunpack.c.l.s8.bf16 %v1142_v43  ;;  %v1309_v46 = vunpack.c.h.s8.bf16 %v1141_v36  ;;  %v1158_v36 = vld [vmem:[#allocation7 + $0x1b0] sm:$0xff] }
 0x22a   :  { %1517 = vmatpush1.bf16.msra.mxu0 %v1288_v50  ;;  %v1145_v50 = vld [vmem:[#allocation7 + $0x148] sm:$0xff] }
 0x22b   :  { %1681 = vmatpush1.bf16.msra.mxu1 %v1290_v52  ;;  %1518 = vmatprep.subr.bf16.mxu0 %v1293_v54  ;;  %v1147_v52 = vld [vmem:[#allocation7 + $0x158] sm:$0xff]  ;;  %v1308_v54 = vunpack.c.h.s8.bf16 %v1140_v42  ;;  %v1313_v56 = vunpack.c.l.s8.bf16 %v1145_v50 }
 0x22c   :  { %1682 = vmatprep.subr.bf16.mxu1 %v1295_v55  ;;  %v1310_v55 = vunpack.c.h.s8.bf16 %v1142_v43  ;;  %v1315_v57 = vunpack.c.l.s8.bf16 %v1147_v52  ;;  %v1342_v43 = vunpack.c.h.s8.bf16 %v1158_v36 }
 0x22e   :  { %1519 = vmatpush1.bf16.msra.mxu0 %v1292_v58  ;;  %v1144_v58 = vld [vmem:[#allocation7 + $0x140] sm:$0xff] }
 0x22f   :  { %1683 = vmatpush1.bf16.msra.mxu1 %v1294_v59  ;;  %1529 = vmatprep.subr.bf16.mxu0 %v1297_v0  ;;  %v1146_v59 = vld [vmem:[#allocation7 + $0x150] sm:$0xff]  ;;  %v1312_v0 = vunpack.c.l.s8.bf16 %v1144_v58 }
 0x230   :  { %1693 = vmatprep.subr.bf16.mxu1 %v1299_v60  ;;  %v1314_v60 = vunpack.c.l.s8.bf16 %v1146_v59 }
 0x244   :  { %v719_v19 = vpop.f32.mrb[4].mxu0  ;;  %v2256_v4 = vpop.f32.mrb[4].mxu1 }
 0x245   :  { %v1014_v7 = vmul.f32 %v977_v62, %v719_v19  ;;  %v721_v8 = vpop.f32.mrb[5].mxu0  ;;  %v803_v9 = vpop.f32.mrb[5].mxu1  ;;  %v1317_v62 = vunpack.c.h.s8.bf16 %v1145_v50  ;;  %v1316_v19 = vunpack.c.h.s8.bf16 %v1144_v58  ;;  %v985_v50 = vrot.slane %v2241_v13, %v2215_v31 }
 0x246   :  { %v1015_v11 = vmul.f32 %v981_v63, %v721_v8  ;;  %v1017_v12 = vmul.f32 %v989_v2, %v803_v9  ;;  %v723_v14 = vpop.f32.mrb[6].mxu0  ;;  %v805_v15 = vpop.f32.mrb[6].mxu1  ;;  %v1319_v63 = vunpack.c.h.s8.bf16 %v1147_v52  ;;  %v1149_v2 = vld [vmem:[#allocation7 + $0x168] sm:$0xff]  ;;  %v1148_v8 = vld [vmem:[#allocation7 + $0x160] sm:$0xff]  ;;  %v1150_v9 = vld [vmem:[#allocation7 + $0x170] sm:$0xff]  ;;  %v1035_v58 = vrot.slane %v2246_v61, %v2215_v31 }
 0x247   :  { %v1064_v16 = vadd.f32 %v1027_v3, %v1014_v7  ;;  %v724_v17 = vpop.f32.mrb[7].mxu0  ;;  %v806_v18 = vpop.f32.mrb[7].mxu1  ;;  %v1151_v3 = vld [vmem:[#allocation7 + $0x178] sm:$0xff]  ;;  %v1325_v14 = vunpack.c.h.s8.bf16 %v1149_v2 }
 0x248   :  { %v1065_v20 = vadd.f32 %v1031_v5, %v1015_v11  ;;  %v1067_v21 = vadd.f32 %v1039_v6, %v1017_v12  ;;  %v1318_v5 = vunpack.c.h.s8.bf16 %v1146_v59  ;;  %v1321_v6 = vunpack.c.l.s8.bf16 %v1149_v2  ;;  %v1155_v17 = vld [vmem:[#allocation7 + $0x198] sm:$0xff]  ;;  %v1165_v59 = vld [vmem:[#allocation7 + $0x1e8] sm:$0xff] }
 0x249   :  { %vm1072_vm5 = vcmp.gt.f32.partialorder %v1064_v16, 0.0  ;;  %v1080_v22 = vmul.f32 0.2, %v1064_v16  ;;  %v1323_v7 = vunpack.c.l.s8.bf16 %v1151_v3  ;;  %v1320_v11 = vunpack.c.l.s8.bf16 %v1148_v8 }
 0x24a   :  { %v1081_v24 = vmul.f32 0.2, %v1065_v20  ;;  %v1083_v25 = vmul.f32 0.2, %v1067_v21  ;;  %vm1073_vm6 = vcmp.gt.f32.partialorder %v1065_v20, 0.0  ;;  %vm1075_vm7 = vcmp.gt.f32.partialorder %v1067_v21, 0.0 }
 0x24b   :  { %v1088_v26 = vsel %vm1072_vm5, %v1064_v16, %v1080_v22  ;;  %v1322_v12 = vunpack.c.l.s8.bf16 %v1150_v9  ;;  %v1327_v15 = vunpack.c.h.s8.bf16 %v1151_v3  ;;  %v1153_v16 = vld [vmem:[#allocation7 + $0x188] sm:$0xff]  ;;  %v1324_v18 = vunpack.c.h.s8.bf16 %v1148_v8  ;;  %v1164_v3 = vld [vmem:[#allocation7 + $0x1e0] sm:$0xff] }
 0x24c   :  { %v1089_v27 = vsel %vm1073_vm6, %v1065_v20, %v1081_v24  ;;  %v1091_v32 = vsel %vm1075_vm7, %v1067_v21, %v1083_v25  ;;  %v1096_v33 = vpack.c.bf16 %v1088_v26, %v1088_v26  ;;  %v1326_v20 = vunpack.c.h.s8.bf16 %v1150_v9 }
 0x24d   :  { %v1097_v28 = vpack.c.bf16 %v1089_v27, %v1089_v27  ;;  %v1099_v38 = vpack.c.bf16 %v1091_v32, %v1091_v32  ;;  %v1329_v21 = vunpack.c.l.s8.bf16 %v1153_v16  ;;  %v1331_v22 = vunpack.c.l.s8.bf16 %v1155_v17 }
 0x24e   :  { %v1328_v24 = vunpack.c.l.s8.bf16 %v1152_v10  ;;  %v1330_v25 = vunpack.c.l.s8.bf16 %v1154_v23  ;;  %v1333_v26 = vunpack.c.h.s8.bf16 %v1153_v16  ;;  %v1335_v27 = vunpack.c.h.s8.bf16 %v1155_v17 }
 0x24f   :  { %1520 = vmatprep.mubr.bf16.mxu0 %v1097_v28  ;;  %1684 = vmatprep.mubr.bf16.mxu1 %v1097_v28  ;;  %v1157_v28 = vld [vmem:[#allocation7 + $0x1a8] sm:$0xff]  ;;  %v1334_v32 = vunpack.c.h.s8.bf16 %v1154_v23 }
 0x250   :  { %1521 = vmatmul.mubr.bf16.vlgmr.msra.gmra.mrb[12].mxu0 %v1096_v33  ;;  %1685 = vmatmul.mubr.bf16.vlgmr.msra.gmra.mrb[12].mxu1 %v1096_v33  ;;  %v1337_v33 = vunpack.c.l.s8.bf16 %v1157_v28 }
 0x251   :  { %1530 = vmatpush1.bf16.msra.mxu0 %v1296_v29  ;;  %1694 = vmatpush1.bf16.msra.mxu1 %v1298_v30  ;;  %v1159_v29 = vld [vmem:[#allocation7 + $0x1b8] sm:$0xff]  ;;  %v1332_v30 = vunpack.c.h.s8.bf16 %v1152_v10 }
 0x252   :  { %1561 = vmatprep.mubr.bf16.mxu0 %v1099_v38  ;;  %1725 = vmatprep.mubr.bf16.mxu1 %v1099_v38  ;;  %v1338_v38 = vunpack.c.l.s8.bf16 %v1158_v36 }
 0x253   :  { %1531 = vmatprep.subr.bf16.mxu0 %v1301_v34  ;;  %1695 = vmatprep.subr.bf16.mxu1 %v1303_v35  ;;  %v1339_v34 = vunpack.c.l.s8.bf16 %v1159_v29  ;;  %v1156_v35 = vld [vmem:[#allocation7 + $0x1a0] sm:$0xff] }
 0x254   :  { %v1336_v37 = vunpack.c.l.s8.bf16 %v1156_v35  ;;  %v1340_v42 = vunpack.c.h.s8.bf16 %v1156_v35 }
 0x255   :  { %1532 = vmatpush1.bf16.msra.mxu0 %v1300_v39  ;;  %1696 = vmatpush1.bf16.msra.mxu1 %v1302_v40  ;;  %v1341_v39 = vunpack.c.h.s8.bf16 %v1157_v28  ;;  %v1343_v40 = vunpack.c.h.s8.bf16 %v1159_v29 }
 0x256   :  { %1533 = vmatprep.subr.bf16.mxu0 %v1305_v1  ;;  %1697 = vmatprep.subr.bf16.mxu1 %v1307_v41  ;;  %v1161_v1 = vld [vmem:[#allocation7 + $0x1c8] sm:$0xff]  ;;  %v1163_v41 = vld [vmem:[#allocation7 + $0x1d8] sm:$0xff] }
 0x259   :  { %1534 = vmatpush1.bf16.msra.mxu0 %v1304_v44  ;;  %1698 = vmatpush1.bf16.msra.mxu1 %v1306_v45  ;;  %v1345_v44 = vunpack.c.l.s8.bf16 %v1161_v1  ;;  %v1347_v45 = vunpack.c.l.s8.bf16 %v1163_v41 }
 0x25a   :  { %1535 = vmatprep.subr.bf16.mxu0 %v1309_v46  ;;  %1699 = vmatprep.subr.bf16.mxu1 %v1311_v47  ;;  %v1160_v46 = vld [vmem:[#allocation7 + $0x1c0] sm:$0xff]  ;;  %v1162_v47 = vld [vmem:[#allocation7 + $0x1d0] sm:$0xff] }
 0x25b   :  { %v1344_v52 = vunpack.c.l.s8.bf16 %v1160_v46 }
 0x25d   :  { %1536 = vmatpush1.bf16.msra.mxu0 %v1308_v54  ;;  %1700 = vmatpush1.bf16.msra.mxu1 %v1310_v55  ;;  %v1346_v54 = vunpack.c.l.s8.bf16 %v1162_v47  ;;  %v1349_v55 = vunpack.c.h.s8.bf16 %v1161_v1 }
 0x25e   :  { %1537 = vmatprep.subr.bf16.mxu0 %v1313_v56  ;;  %1701 = vmatprep.subr.bf16.mxu1 %v1315_v57  ;;  %v1351_v56 = vunpack.c.h.s8.bf16 %v1163_v41  ;;  %v1016_v57 = vmul.f32 %v985_v50, %v2256_v4 }
 0x261   :  { %1538 = vmatpush1.bf16.msra.mxu0 %v1312_v0  ;;  %1702 = vmatpush1.bf16.msra.mxu1 %v1314_v60  ;;  %v1167_v0 = vld [vmem:[#allocation7 + $0x1f8] sm:$0xff]  ;;  %v1348_v60 = vunpack.c.h.s8.bf16 %v1160_v46 }
 0x262   :  { %1539 = vmatprep.subr.bf16.mxu0 %v1317_v62  ;;  %1703 = vmatprep.subr.bf16.mxu1 %v1319_v63  ;;  %v1350_v62 = vunpack.c.h.s8.bf16 %v1162_v47  ;;  %v1353_v63 = vunpack.c.l.s8.bf16 %v1165_v59  ;;  %v1355_v2 = vunpack.c.l.s8.bf16 %v1167_v0  ;;  %v1359_v8 = vunpack.c.h.s8.bf16 %v1167_v0  ;;  %v1180_v0 = vld [vmem:[#allocation7 + $0x260] sm:$0xff] }
 0x265   :  { %1540 = vmatpush1.bf16.msra.mxu0 %v1316_v19  ;;  %1704 = vmatpush1.bf16.msra.mxu1 %v1318_v5  ;;  %v1166_v19 = vld [vmem:[#allocation7 + $0x1f0] sm:$0xff]  ;;  %v1066_v5 = vadd.f32 %v1035_v58, %v1016_v57 }
 0x266   :  { %1541 = vmatprep.subr.bf16.mxu0 %v1321_v6  ;;  %1705 = vmatprep.subr.bf16.mxu1 %v1323_v7  ;;  %v1352_v6 = vunpack.c.l.s8.bf16 %v1164_v3  ;;  %v1354_v4 = vunpack.c.l.s8.bf16 %v1166_v19  ;;  %v1357_v7 = vunpack.c.h.s8.bf16 %v1165_v59 }
 0x267   :  { %v1082_v9 = vmul.f32 0.2, %v1066_v5  ;;  %vm1074_vm8 = vcmp.gt.f32.partialorder %v1066_v5, 0.0 }
 0x269   :  { %1542 = vmatpush1.bf16.msra.mxu0 %v1320_v11  ;;  %1706 = vmatpush1.bf16.msra.mxu1 %v1322_v12  ;;  %v1169_v11 = vld [vmem:[#allocation7 + $0x208] sm:$0xff]  ;;  %v1171_v12 = vld [vmem:[#allocation7 + $0x218] sm:$0xff] }
 0x26a   :  { %1543 = vmatprep.subr.bf16.mxu0 %v1325_v14  ;;  %1707 = vmatprep.subr.bf16.mxu1 %v1327_v15  ;;  %v1356_v14 = vunpack.c.h.s8.bf16 %v1164_v3  ;;  %v1358_v15 = vunpack.c.h.s8.bf16 %v1166_v19  ;;  %v1361_v16 = vunpack.c.l.s8.bf16 %v1169_v11  ;;  %v1363_v17 = vunpack.c.l.s8.bf16 %v1171_v12  ;;  %v1185_v19 = vld [vmem:[#allocation7 + $0x288] sm:$0xff] }
 0x26d   :  { %1544 = vmatpush1.bf16.msra.mxu0 %v1324_v18  ;;  %1708 = vmatpush1.bf16.msra.mxu1 %v1326_v20  ;;  %v1168_v18 = vld [vmem:[#allocation7 + $0x200] sm:$0xff]  ;;  %v1170_v20 = vld [vmem:[#allocation7 + $0x210] sm:$0xff] }
 0x26e   :  { %1545 = vmatprep.subr.bf16.mxu0 %v1329_v21  ;;  %1709 = vmatprep.subr.bf16.mxu1 %v1331_v22  ;;  %v1090_v21 = vsel %vm1074_vm8, %v1066_v5, %v1082_v9  ;;  %v1360_v22 = vunpack.c.l.s8.bf16 %v1168_v18  ;;  %v1362_v10 = vunpack.c.l.s8.bf16 %v1170_v20  ;;  %v1364_v28 = vunpack.c.h.s8.bf16 %v1168_v18  ;;  %v1187_v5 = vld [vmem:[#allocation7 + $0x298] sm:$0xff]  ;;  %v1184_v9 = vld [vmem:[#allocation7 + $0x280] sm:$0xff] }
 0x26f   :  { %v1098_v23 = vpack.c.bf16 %v1090_v21, %v1090_v21  ;;  %v1366_v29 = vunpack.c.h.s8.bf16 %v1170_v20  ;;  %v1191_v18 = vld [vmem:[#allocation7 + $0x2b8] sm:$0xff]  ;;  %v1396_v20 = vunpack.c.h.s8.bf16 %v1184_v9 }
 0x271   :  { %1546 = vmatpush1.bf16.msra.mxu0 %v1328_v24  ;;  %1710 = vmatpush1.bf16.msra.mxu1 %v1330_v25  ;;  %v1365_v24 = vunpack.c.h.s8.bf16 %v1169_v11  ;;  %v1367_v25 = vunpack.c.h.s8.bf16 %v1171_v12  ;;  %v1186_v11 = vld [vmem:[#allocation7 + $0x290] sm:$0xff]  ;;  %v1392_v12 = vunpack.c.l.s8.bf16 %v1184_v9 }
 0x272   :  { %1547 = vmatprep.subr.bf16.mxu0 %v1333_v26  ;;  %1711 = vmatprep.subr.bf16.mxu1 %v1335_v27  ;;  %v1173_v26 = vld [vmem:[#allocation7 + $0x228] sm:$0xff]  ;;  %v1175_v27 = vld [vmem:[#allocation7 + $0x238] sm:$0xff]  ;;  %v1398_v21 = vunpack.c.h.s8.bf16 %v1186_v11 }
 0x275   :  { %1548 = vmatpush1.bf16.msra.mxu0 %v1332_v30  ;;  %1712 = vmatpush1.bf16.msra.mxu1 %v1334_v32  ;;  %v1369_v30 = vunpack.c.l.s8.bf16 %v1173_v26  ;;  %v1371_v32 = vunpack.c.l.s8.bf16 %v1175_v27 }
 0x276   :  { %1549 = vmatprep.subr.bf16.mxu0 %v1337_v33  ;;  %1713 = vmatprep.subr.bf16.mxu1 %v1339_v34  ;;  %v1172_v33 = vld [vmem:[#allocation7 + $0x220] sm:$0xff]  ;;  %v1174_v34 = vld [vmem:[#allocation7 + $0x230] sm:$0xff] }
 0x277   :  { %v1368_v35 = vunpack.c.l.s8.bf16 %v1172_v33  ;;  %v1370_v36 = vunpack.c.l.s8.bf16 %v1174_v34  ;;  %v1372_v1 = vunpack.c.h.s8.bf16 %v1172_v33  ;;  %v1374_v41 = vunpack.c.h.s8.bf16 %v1174_v34 }
 0x279   :  { %1550 = vmatpush1.bf16.msra.mxu0 %v1336_v37  ;;  %1714 = vmatpush1.bf16.msra.mxu1 %v1338_v38  ;;  %v1373_v37 = vunpack.c.h.s8.bf16 %v1173_v26  ;;  %v1375_v38 = vunpack.c.h.s8.bf16 %v1175_v27 }
 0x27a   :  { %1551 = vmatprep.subr.bf16.mxu0 %v1341_v39  ;;  %1715 = vmatprep.subr.bf16.mxu1 %v1343_v40  ;;  %v1177_v39 = vld [vmem:[#allocation7 + $0x248] sm:$0xff]  ;;  %v1179_v40 = vld [vmem:[#allocation7 + $0x258] sm:$0xff] }
 0x27b   :  { %v1381_v50 = vunpack.c.h.s8.bf16 %v1177_v39 }
 0x27d   :  { %1552 = vmatpush1.bf16.msra.mxu0 %v1340_v42  ;;  %1716 = vmatpush1.bf16.msra.mxu1 %v1342_v43  ;;  %v1377_v42 = vunpack.c.l.s8.bf16 %v1177_v39  ;;  %v1379_v43 = vunpack.c.l.s8.bf16 %v1179_v40 }
 0x27e   :  { %1553 = vmatprep.subr.bf16.mxu0 %v1345_v44  ;;  %1717 = vmatprep.subr.bf16.mxu1 %v1347_v45  ;;  %v1176_v44 = vld [vmem:[#allocation7 + $0x240] sm:$0xff]  ;;  %v1178_v45 = vld [vmem:[#allocation7 + $0x250] sm:$0xff] }
 0x27f   :  { %v1376_v46 = vunpack.c.l.s8.bf16 %v1176_v44  ;;  %v1378_v47 = vunpack.c.l.s8.bf16 %v1178_v45  ;;  %v1382_v57 = vunpack.c.h.s8.bf16 %v1178_v45  ;;  %v1199_v45 = vld [vmem:[#allocation7 + $0x2f8] sm:$0xff] }
 0x281   :  { %1554 = vmatpush1.bf16.msra.mxu0 %v1344_v52  ;;  %1718 = vmatpush1.bf16.msra.mxu1 %v1346_v54  ;;  %v1383_v52 = vunpack.c.h.s8.bf16 %v1179_v40  ;;  %v1181_v54 = vld [vmem:[#allocation7 + $0x268] sm:$0xff]  ;;  %v992_v40 = vsub.s32 4, %v2181_v48 }
 0x282   :  { %1555 = vmatprep.subr.bf16.mxu0 %v1349_v55  ;;  %1719 = vmatprep.subr.bf16.mxu1 %v1351_v56  ;;  %v1183_v55 = vld [vmem:[#allocation7 + $0x278] sm:$0xff]  ;;  %v1380_v56 = vunpack.c.h.s8.bf16 %v1176_v44  ;;  %v1385_v58 = vunpack.c.l.s8.bf16 %v1181_v54  ;;  %v1197_v44 = vld [vmem:[#allocation7 + $0x2e8] sm:$0xff] }
 0x283   :  { %v1387_v59 = vunpack.c.l.s8.bf16 %v1183_v55  ;;  %v1391_v3 = vunpack.c.h.s8.bf16 %v1183_v55  ;;  %v1419_v55 = vunpack.c.l.s8.bf16 %v1199_v45 }
 0x285   :  { %1556 = vmatpush1.bf16.msra.mxu0 %v1348_v60  ;;  %1720 = vmatpush1.bf16.msra.mxu1 %v1350_v62  ;;  %v1182_v60 = vld [vmem:[#allocation7 + $0x270] sm:$0xff]  ;;  %v1384_v62 = vunpack.c.l.s8.bf16 %v1180_v0 }
 0x286   :  { %1557 = vmatprep.subr.bf16.mxu0 %v1353_v63  ;;  %1721 = vmatprep.subr.bf16.mxu1 %v1355_v2  ;;  %v1386_v63 = vunpack.c.l.s8.bf16 %v1182_v60  ;;  %v1389_v2 = vunpack.c.h.s8.bf16 %v1181_v54  ;;  %v1417_v54 = vunpack.c.l.s8.bf16 %v1197_v44 }
 0x289   :  { %1558 = vmatpush1.bf16.msra.mxu0 %v1352_v6  ;;  %1722 = vmatpush1.bf16.msra.mxu1 %v1354_v4  ;;  %v1388_v6 = vunpack.c.h.s8.bf16 %v1180_v0  ;;  %v1390_v4 = vunpack.c.h.s8.bf16 %v1182_v60 }
 0x28a   :  { %1559 = vmatprep.subr.bf16.mxu0 %v1357_v7  ;;  %1723 = vmatprep.subr.bf16.mxu1 %v1359_v8  ;;  %v1393_v7 = vunpack.c.l.s8.bf16 %v1185_v19  ;;  %v1395_v8 = vunpack.c.l.s8.bf16 %v1187_v5 }
 0x28d   :  { %1560 = vmatpush1.bf16.msra.mxu0 %v1356_v14  ;;  %1724 = vmatpush1.bf16.msra.mxu1 %v1358_v15  ;;  %v1394_v14 = vunpack.c.l.s8.bf16 %v1186_v11  ;;  %v1397_v15 = vunpack.c.h.s8.bf16 %v1185_v19 }
 0x28e   :  { %1570 = vmatprep.subr.bf16.mxu0 %v1361_v16  ;;  %1734 = vmatprep.subr.bf16.mxu1 %v1363_v17  ;;  %v1399_v16 = vunpack.c.h.s8.bf16 %v1187_v5  ;;  %v1189_v17 = vld [vmem:[#allocation7 + $0x2a8] sm:$0xff] }
 0x28f   :  { %v1405_v27 = vunpack.c.h.s8.bf16 %v1189_v17 }
 0x290   :  { %1562 = vmatmul.mubr.bf16.vlgmr.msra.gmra.mrb[12].mxu0 %v1098_v23  ;;  %1726 = vmatmul.mubr.bf16.vlgmr.msra.gmra.mrb[12].mxu1 %v1098_v23  ;;  %v1188_v23 = vld [vmem:[#allocation7 + $0x2a0] sm:$0xff] }
 0x291   :  { %1571 = vmatpush1.bf16.msra.mxu0 %v1360_v22  ;;  %1735 = vmatpush1.bf16.msra.mxu1 %v1362_v10  ;;  %v1401_v22 = vunpack.c.l.s8.bf16 %v1189_v17  ;;  %v1403_v10 = vunpack.c.l.s8.bf16 %v1191_v18 }
 0x292   :  { %1572 = vmatprep.subr.bf16.mxu0 %v1365_v24  ;;  %1736 = vmatprep.subr.bf16.mxu1 %v1367_v25  ;;  %v1190_v24 = vld [vmem:[#allocation7 + $0x2b0] sm:$0xff]  ;;  %v1400_v25 = vunpack.c.l.s8.bf16 %v1188_v23 }
 0x293   :  { %v1402_v26 = vunpack.c.l.s8.bf16 %v1190_v24  ;;  %v1406_v33 = vunpack.c.h.s8.bf16 %v1190_v24 }
 0x295   :  { %1573 = vmatpush1.bf16.msra.mxu0 %v1364_v28  ;;  %1737 = vmatpush1.bf16.msra.mxu1 %v1366_v29  ;;  %v1407_v28 = vunpack.c.h.s8.bf16 %v1191_v18  ;;  %v1193_v29 = vld [vmem:[#allocation7 + $0x2c8] sm:$0xff] }
 0x296   :  { %1574 = vmatprep.subr.bf16.mxu0 %v1369_v30  ;;  %1738 = vmatprep.subr.bf16.mxu1 %v1371_v32  ;;  %v1195_v30 = vld [vmem:[#allocation7 + $0x2d8] sm:$0xff]  ;;  %v1404_v32 = vunpack.c.h.s8.bf16 %v1188_v23  ;;  %v1409_v34 = vunpack.c.l.s8.bf16 %v1193_v29 }
 0x299   :  { %1575 = vmatpush1.bf16.msra.mxu0 %v1368_v35  ;;  %1739 = vmatpush1.bf16.msra.mxu1 %v1370_v36  ;;  %v1411_v35 = vunpack.c.l.s8.bf16 %v1195_v30  ;;  %v1192_v36 = vld [vmem:[#allocation7 + $0x2c0] sm:$0xff] }
 0x29a   :  { %1576 = vmatprep.subr.bf16.mxu0 %v1373_v37  ;;  %1740 = vmatprep.subr.bf16.mxu1 %v1375_v38  ;;  %v1194_v37 = vld [vmem:[#allocation7 + $0x2d0] sm:$0xff]  ;;  %v1408_v38 = vunpack.c.l.s8.bf16 %v1192_v36 }
 0x29b   :  { %v1410_v39 = vunpack.c.l.s8.bf16 %v1194_v37 }
 0x29d   :  { %1577 = vmatpush1.bf16.msra.mxu0 %v1372_v1  ;;  %1741 = vmatpush1.bf16.msra.mxu1 %v1374_v41  ;;  %v1413_v1 = vunpack.c.h.s8.bf16 %v1193_v29  ;;  %v1415_v41 = vunpack.c.h.s8.bf16 %v1195_v30 }
 0x29e   :  { %1578 = vmatprep.subr.bf16.mxu0 %v1377_v42  ;;  %1742 = vmatprep.subr.bf16.mxu1 %v1379_v43  ;;  %v996_v42 = vsub.s32 5, %v2181_v48  ;;  %v1004_v43 = vsub.s32 7, %v2181_v48 }
 0x2a0   :  { %v1047_v60 = vrot.slane %v2246_v61, %v996_v42 }
 0x2a1   :  { %1579 = vmatpush1.bf16.msra.mxu0 %v1376_v46  ;;  %1743 = vmatpush1.bf16.msra.mxu1 %v1378_v47  ;;  %v993_v46 = vrot.slane %v2241_v13, %v992_v40  ;;  %v1412_v47 = vunpack.c.h.s8.bf16 %v1192_v36 }
 0x2a2   :  { %1580 = vmatprep.subr.bf16.mxu0 %v1381_v50  ;;  %1744 = vmatprep.subr.bf16.mxu1 %v1383_v52  ;;  %v1414_v50 = vunpack.c.h.s8.bf16 %v1194_v37  ;;  %v997_v52 = vrot.slane %v2241_v13, %v996_v42 }
 0x2a5   :  { %1581 = vmatpush1.bf16.msra.mxu0 %v1380_v56  ;;  %1745 = vmatpush1.bf16.msra.mxu1 %v1382_v57  ;;  %v1196_v56 = vld [vmem:[#allocation7 + $0x2e0] sm:$0xff]  ;;  %v1198_v57 = vld [vmem:[#allocation7 + $0x2f0] sm:$0xff] }
 0x2a6   :  { %1582 = vmatprep.subr.bf16.mxu0 %v1385_v58  ;;  %1746 = vmatprep.subr.bf16.mxu1 %v1387_v59  ;;  %v1043_v58 = vrot.slane %v2246_v61, %v992_v40  ;;  %v1005_v59 = vrot.slane %v2241_v13, %v1004_v43  ;;  %v1416_v19 = vunpack.c.l.s8.bf16 %v1196_v56  ;;  %v1418_v5 = vunpack.c.l.s8.bf16 %v1198_v57 }
 0x2a7   :  { %v1423_v13 = vunpack.c.h.s8.bf16 %v1199_v45  ;;  %v1206_v45 = vld [vmem:[#allocation7 + $0x330] sm:$0xff] }
 0x2a9   :  { %1583 = vmatpush1.bf16.msra.mxu0 %v1384_v62  ;;  %1747 = vmatpush1.bf16.msra.mxu1 %v1386_v63 }
 0x2aa   :  { %1584 = vmatprep.subr.bf16.mxu0 %v1389_v2  ;;  %1748 = vmatprep.subr.bf16.mxu1 %v1391_v3  ;;  %v1055_v3 = vrot.slane %v2246_v61, %v1004_v43 }
 0x2ad   :  { %1585 = vmatpush1.bf16.msra.mxu0 %v1388_v6  ;;  %1749 = vmatpush1.bf16.msra.mxu1 %v1390_v4 }
 0x2ae   :  { %1586 = vmatprep.subr.bf16.mxu0 %v1393_v7  ;;  %1750 = vmatprep.subr.bf16.mxu1 %v1395_v8  ;;  %v1421_v8 = vunpack.c.h.s8.bf16 %v1197_v44  ;;  %v1204_v44 = vld [vmem:[#allocation7 + $0x320] sm:$0xff] }
 0x2b1   :  { %1587 = vmatpush1.bf16.msra.mxu0 %v1392_v12  ;;  %1751 = vmatpush1.bf16.msra.mxu1 %v1394_v14 }
 0x2b2   :  { %1588 = vmatprep.subr.bf16.mxu0 %v1397_v15  ;;  %1752 = vmatprep.subr.bf16.mxu1 %v1399_v16  ;;  %v1201_v15 = vld [vmem:[#allocation7 + $0x308] sm:$0xff]  ;;  %v1203_v16 = vld [vmem:[#allocation7 + $0x318] sm:$0xff] }
 0x2b3   :  { %v1425_v23 = vunpack.c.l.s8.bf16 %v1201_v15  ;;  %v1427_v24 = vunpack.c.l.s8.bf16 %v1203_v16  ;;  %v1429_v36 = vunpack.c.h.s8.bf16 %v1201_v15  ;;  %v1431_v37 = vunpack.c.h.s8.bf16 %v1203_v16 }
 0x2b5   :  { %1589 = vmatpush1.bf16.msra.mxu0 %v1396_v20  ;;  %1753 = vmatpush1.bf16.msra.mxu1 %v1398_v21  ;;  %v1420_v20 = vunpack.c.h.s8.bf16 %v1196_v56  ;;  %v1436_v56 = vunpack.c.h.s8.bf16 %v1204_v44 }
 0x2b6   :  { %1590 = vmatprep.subr.bf16.mxu0 %v1401_v22  ;;  %1754 = vmatprep.subr.bf16.mxu1 %v1403_v10  ;;  %v1422_v22 = vunpack.c.h.s8.bf16 %v1198_v57  ;;  %v1438_v57 = vunpack.c.h.s8.bf16 %v1206_v45 }
 0x2b9   :  { %1591 = vmatpush1.bf16.msra.mxu0 %v1400_v25  ;;  %1755 = vmatpush1.bf16.msra.mxu1 %v1402_v26  ;;  %v1200_v25 = vld [vmem:[#allocation7 + $0x300] sm:$0xff]  ;;  %v1202_v26 = vld [vmem:[#allocation7 + $0x310] sm:$0xff] }
 0x2ba   :  { %1592 = vmatprep.subr.bf16.mxu0 %v1405_v27  ;;  %1756 = vmatprep.subr.bf16.mxu1 %v1407_v28 }
 0x2bd   :  { %1593 = vmatpush1.bf16.msra.mxu0 %v1404_v32  ;;  %1757 = vmatpush1.bf16.msra.mxu1 %v1406_v33  ;;  %v1424_v32 = vunpack.c.l.s8.bf16 %v1200_v25  ;;  %v1426_v33 = vunpack.c.l.s8.bf16 %v1202_v26 }
 0x2be   :  { %1594 = vmatprep.subr.bf16.mxu0 %v1409_v34  ;;  %1758 = vmatprep.subr.bf16.mxu1 %v1411_v35 }
 0x2c1   :  { %1595 = vmatpush1.bf16.msra.mxu0 %v1408_v38  ;;  %1759 = vmatpush1.bf16.msra.mxu1 %v1410_v39  ;;  %v1205_v38 = vld [vmem:[#allocation7 + $0x328] sm:$0xff]  ;;  %v1207_v39 = vld [vmem:[#allocation7 + $0x338] sm:$0xff] }
 0x2c2   :  { %1596 = vmatprep.subr.bf16.mxu0 %v1413_v1  ;;  %1760 = vmatprep.subr.bf16.mxu1 %v1415_v41  ;;  %v1428_v1 = vunpack.c.h.s8.bf16 %v1200_v25  ;;  %v1430_v41 = vunpack.c.h.s8.bf16 %v1202_v26  ;;  %v1433_v42 = vunpack.c.l.s8.bf16 %v1205_v38  ;;  %v1435_v43 = vunpack.c.l.s8.bf16 %v1207_v39 }
 0x2c4   :  { %v883_v0 = vpop.f32.mrb[8].mxu0 }
 0x2c5   :  { %v1018_v62 = vmul.f32 %v993_v46, %v883_v0  ;;  %v2277_v63 = vpop.f32.mrb[8].mxu1  ;;  %1597 = vmatpush1.bf16.msra.mxu0 %v1412_v47  ;;  %1761 = vmatpush1.bf16.msra.mxu1 %v1414_v50  ;;  %v885_v2 = vpop.f32.mrb[9].mxu0  ;;  %v1432_v46 = vunpack.c.l.s8.bf16 %v1204_v44  ;;  %v1434_v47 = vunpack.c.l.s8.bf16 %v1206_v45  ;;  %v1437_v50 = vunpack.c.h.s8.bf16 %v1205_v38  ;;  %v1208_v0 = vld [vmem:[#allocation7 + $0x340] sm:$0xff] }
 0x2c6   :  { %v1019_v6 = vmul.f32 %v997_v52, %v885_v2  ;;  %v967_v4 = vpop.f32.mrb[9].mxu1  ;;  %v887_v7 = vpop.f32.mrb[10].mxu0  ;;  %1598 = vmatprep.subr.bf16.mxu0 %v1417_v54  ;;  %1762 = vmatprep.subr.bf16.mxu1 %v1419_v55  ;;  %v1439_v52 = vunpack.c.h.s8.bf16 %v1207_v39  ;;  %v1209_v54 = vld [vmem:[#allocation7 + $0x348] sm:$0xff]  ;;  %v1211_v55 = vld [vmem:[#allocation7 + $0x358] sm:$0xff] }
 0x2c7   :  { %v1068_v9 = vadd.f32 %v1043_v58, %v1018_v62  ;;  %v1021_v11 = vmul.f32 %v1005_v59, %v967_v4  ;;  %v969_v12 = vpop.f32.mrb[10].mxu1  ;;  %v888_v14 = vpop.f32.mrb[11].mxu0  ;;  %v1441_v58 = vunpack.c.l.s8.bf16 %v1209_v54  ;;  %v1443_v59 = vunpack.c.l.s8.bf16 %v1211_v55 }
 0x2c8   :  { %v1069_v17 = vadd.f32 %v1047_v60, %v1019_v6  ;;  %v970_v18 = vpop.f32.mrb[11].mxu1  ;;  %v1210_v60 = vld [vmem:[#allocation7 + $0x350] sm:$0xff]  ;;  %v1440_v62 = vunpack.c.l.s8.bf16 %v1208_v0  ;;  %v1215_v6 = vld [vmem:[#allocation7 + $0x378] sm:$0xff]  ;;  %v1444_v4 = vunpack.c.h.s8.bf16 %v1208_v0 }
 0x2c9   :  { %vm1076_vm9 = vcmp.gt.f32.partialorder %v1068_v9, 0.0  ;;  %v1084_v61 = vmul.f32 0.2, %v1068_v9  ;;  %v1071_v21 = vadd.f32 %v1055_v3, %v1021_v11  ;;  %1599 = vmatpush1.bf16.msra.mxu0 %v1416_v19  ;;  %1763 = vmatpush1.bf16.msra.mxu1 %v1418_v5  ;;  %v1442_v2 = vunpack.c.l.s8.bf16 %v1210_v60  ;;  %v1213_v5 = vld [vmem:[#allocation7 + $0x368] sm:$0xff]  ;;  %v1214_v11 = vld [vmem:[#allocation7 + $0x370] sm:$0xff]  ;;  %v1219_v18 = vld [vmem:[#allocation7 + $0x398] sm:$0xff] }
 0x2ca   :  { %v1085_v10 = vmul.f32 0.2, %v1069_v17  ;;  %1600 = vmatprep.subr.bf16.mxu0 %v1421_v8  ;;  %1764 = vmatprep.subr.bf16.mxu1 %v1423_v13  ;;  %vm1077_vm10 = vcmp.gt.f32.partialorder %v1069_v17, 0.0  ;;  %v1445_v3 = vunpack.c.h.s8.bf16 %v1209_v54  ;;  %v1447_v19 = vunpack.c.h.s8.bf16 %v1211_v55 }
 0x2cb   :  { %v1092_v27 = vsel %vm1076_vm9, %v1068_v9, %v1084_v61  ;;  %v1087_v28 = vmul.f32 0.2, %v1071_v21  ;;  %vm1079_vm11 = vcmp.gt.f32.partialorder %v1071_v21, 0.0  ;;  %v1446_v7 = vunpack.c.h.s8.bf16 %v1210_v60  ;;  %v1212_v9 = vld [vmem:[#allocation7 + $0x360] sm:$0xff]  ;;  %v1229_v60 = vld [vmem:[#allocation7 + $0x3e8] sm:$0xff] }
 0x2cc   :  { %v1093_v29 = vsel %vm1077_vm10, %v1069_v17, %v1085_v10  ;;  %v1100_v35 = vpack.c.bf16 %v1092_v27, %v1092_v27  ;;  %v1449_v8 = vunpack.c.l.s8.bf16 %v1213_v5  ;;  %v1451_v13 = vunpack.c.l.s8.bf16 %v1215_v6  ;;  %v1217_v17 = vld [vmem:[#allocation7 + $0x388] sm:$0xff]  ;;  %v1216_v10 = vld [vmem:[#allocation7 + $0x380] sm:$0xff] }
 0x2cd   :  { %1601 = vmatpush1.bf16.msra.mxu0 %v1420_v20  ;;  %1765 = vmatpush1.bf16.msra.mxu1 %v1422_v22  ;;  %v1101_v30 = vpack.c.bf16 %v1093_v29, %v1093_v29  ;;  %v1095_v34 = vsel %vm1079_vm11, %v1071_v21, %v1087_v28  ;;  %v1448_v12 = vunpack.c.l.s8.bf16 %v1212_v9  ;;  %v1450_v14 = vunpack.c.l.s8.bf16 %v1214_v11  ;;  %v1221_v28 = vld [vmem:[#allocation7 + $0x3a8] sm:$0xff]  ;;  %v1223_v29 = vld [vmem:[#allocation7 + $0x3b8] sm:$0xff] }
 0x2ce   :  { %1611 = vmatprep.subr.bf16.mxu0 %v1425_v23  ;;  %1775 = vmatprep.subr.bf16.mxu1 %v1427_v24  ;;  %v1103_v40 = vpack.c.bf16 %v1095_v34, %v1095_v34  ;;  %v1453_v15 = vunpack.c.h.s8.bf16 %v1213_v5  ;;  %v1455_v16 = vunpack.c.h.s8.bf16 %v1215_v6  ;;  %v1452_v20 = vunpack.c.h.s8.bf16 %v1212_v9  ;;  %v1218_v23 = vld [vmem:[#allocation7 + $0x390] sm:$0xff]  ;;  %v1228_v6 = vld [vmem:[#allocation7 + $0x3e0] sm:$0xff] }
 0x2cf   :  { %1602 = vmatprep.mubr.bf16.mxu0 %v1101_v30  ;;  %1766 = vmatprep.mubr.bf16.mxu1 %v1101_v30  ;;  %v1454_v61 = vunpack.c.h.s8.bf16 %v1214_v11  ;;  %v1457_v21 = vunpack.c.l.s8.bf16 %v1217_v17  ;;  %v1459_v22 = vunpack.c.l.s8.bf16 %v1219_v18  ;;  %v1456_v24 = vunpack.c.l.s8.bf16 %v1216_v10 }
 0x2d0   :  { %1603 = vmatmul.mubr.bf16.vlgmr.msra.gmra.mrb[12].mxu0 %v1100_v35  ;;  %1767 = vmatmul.mubr.bf16.vlgmr.msra.gmra.mrb[12].mxu1 %v1100_v35  ;;  %v1458_v25 = vunpack.c.l.s8.bf16 %v1218_v23  ;;  %v1461_v26 = vunpack.c.h.s8.bf16 %v1217_v17  ;;  %v1463_v27 = vunpack.c.h.s8.bf16 %v1219_v18  ;;  %v1460_v30 = vunpack.c.h.s8.bf16 %v1216_v10  ;;  %v1220_v35 = vld [vmem:[#allocation7 + $0x3a0] sm:$0xff] }
 0x2d1   :  { %1612 = vmatpush1.bf16.msra.mxu0 %v1424_v32  ;;  %1776 = vmatpush1.bf16.msra.mxu1 %v1426_v33  ;;  %v1462_v32 = vunpack.c.h.s8.bf16 %v1218_v23  ;;  %v1465_v33 = vunpack.c.l.s8.bf16 %v1221_v28  ;;  %v1467_v34 = vunpack.c.l.s8.bf16 %v1223_v29  ;;  %v1469_v39 = vunpack.c.h.s8.bf16 %v1221_v28  ;;  %v1816_v17 = vld [vmem:[%s2321_s7] sm:$0xf] }
 0x2d2   :  { %1643 = vmatprep.mubr.bf16.mxu0 %v1103_v40  ;;  %1807 = vmatprep.mubr.bf16.mxu1 %v1103_v40  ;;  %v1471_v40 = vunpack.c.h.s8.bf16 %v1223_v29  ;;  %v1842_v18 = vld [vmem:[%s2322_s8] sm:$0xf] }
 0x2d3   :  { %1613 = vmatprep.subr.bf16.mxu0 %v1429_v36  ;;  %1777 = vmatprep.subr.bf16.mxu1 %v1431_v37  ;;  %v1222_v36 = vld [vmem:[#allocation7 + $0x3b0] sm:$0xff]  ;;  %v1464_v37 = vunpack.c.l.s8.bf16 %v1220_v35  ;;  %v1847_v10 = vrot.slane %v1842_v18, %v2184_v49  ;;  %v1855_v23 = vrot.slane %v1842_v18, %v2215_v31 }
 0x2d4   :  { %v1466_v38 = vunpack.c.l.s8.bf16 %v1222_v36  ;;  %v1470_v44 = vunpack.c.h.s8.bf16 %v1222_v36 }
 0x2d5   :  { %1614 = vmatpush1.bf16.msra.mxu0 %v1428_v1  ;;  %1778 = vmatpush1.bf16.msra.mxu1 %v1430_v41  ;;  %v1000_v1 = vsub.s32 6, %v2181_v48  ;;  %v1225_v41 = vld [vmem:[#allocation7 + $0x3c8] sm:$0xff] }
 0x2d6   :  { %1615 = vmatprep.subr.bf16.mxu0 %v1433_v42  ;;  %1779 = vmatprep.subr.bf16.mxu1 %v1435_v43  ;;  %v1227_v42 = vld [vmem:[#allocation7 + $0x3d8] sm:$0xff]  ;;  %v1468_v43 = vunpack.c.h.s8.bf16 %v1220_v35  ;;  %v1473_v45 = vunpack.c.l.s8.bf16 %v1225_v41 }
 0x2d9   :  { %1616 = vmatpush1.bf16.msra.mxu0 %v1432_v46  ;;  %1780 = vmatpush1.bf16.msra.mxu1 %v1434_v47  ;;  %v1475_v46 = vunpack.c.l.s8.bf16 %v1227_v42  ;;  %v1224_v47 = vld [vmem:[#allocation7 + $0x3c0] sm:$0xff] }
 0x2da   :  { %1617 = vmatprep.subr.bf16.mxu0 %v1437_v50  ;;  %1781 = vmatprep.subr.bf16.mxu1 %v1439_v52  ;;  %v1226_v50 = vld [vmem:[#allocation7 + $0x3d0] sm:$0xff]  ;;  %v1964_v52 = vld [vmem:[%s2318_s4] sm:$0xff]  ;;  %v1472_v48 = vunpack.c.l.s8.bf16 %v1224_v47 }
 0x2db   :  { %v1001_v54 = vrot.slane %v1964_v52, %v1000_v1  ;;  %v1474_v55 = vunpack.c.l.s8.bf16 %v1226_v50 }
 0x2dd   :  { %1618 = vmatpush1.bf16.msra.mxu0 %v1436_v56  ;;  %1782 = vmatpush1.bf16.msra.mxu1 %v1438_v57  ;;  %v1477_v56 = vunpack.c.h.s8.bf16 %v1225_v41  ;;  %v1479_v57 = vunpack.c.h.s8.bf16 %v1227_v42 }
 0x2de   :  { %1619 = vmatprep.subr.bf16.mxu0 %v1441_v58  ;;  %1783 = vmatprep.subr.bf16.mxu1 %v1443_v59  ;;  %v1020_v58 = vmul.f32 %v1001_v54, %v2277_v63  ;;  %v1965_v59 = vld [vmem:[%s2319_s5] sm:$0xff]  ;;  %v1480_v63 = vunpack.c.l.s8.bf16 %v1228_v6 }
 0x2df   :  { %v1051_v0 = vrot.slane %v1965_v59, %v1000_v1 }
 0x2e1   :  { %1620 = vmatpush1.bf16.msra.mxu0 %v1440_v62  ;;  %1784 = vmatpush1.bf16.msra.mxu1 %v1442_v2  ;;  %v1231_v62 = vld [vmem:[#allocation7 + $0x3f8] sm:$0xff]  ;;  %v1476_v2 = vunpack.c.h.s8.bf16 %v1224_v47 }
 0x2e2   :  { %1621 = vmatprep.subr.bf16.mxu0 %v1445_v3  ;;  %1785 = vmatprep.subr.bf16.mxu1 %v1447_v19  ;;  %v1478_v3 = vunpack.c.h.s8.bf16 %v1226_v50  ;;  %v1481_v19 = vunpack.c.l.s8.bf16 %v1229_v60  ;;  %v1483_v5 = vunpack.c.l.s8.bf16 %v1231_v62  ;;  %v1487_v9 = vunpack.c.h.s8.bf16 %v1231_v62 }
 0x2e5   :  { %1622 = vmatpush1.bf16.msra.mxu0 %v1444_v4  ;;  %1786 = vmatpush1.bf16.msra.mxu1 %v1446_v7  ;;  %v1230_v4 = vld [vmem:[#allocation7 + $0x3f0] sm:$0xff]  ;;  %v1070_v7 = vadd.f32 %v1051_v0, %v1020_v58 }
 0x2e6   :  { %1623 = vmatprep.subr.bf16.mxu0 %v1449_v8  ;;  %1787 = vmatprep.subr.bf16.mxu1 %v1451_v13  ;;  %v1482_v8 = vunpack.c.l.s8.bf16 %v1230_v4  ;;  %v1485_v13 = vunpack.c.h.s8.bf16 %v1229_v60 }
 0x2e7   :  { %v1086_v11 = vmul.f32 0.2, %v1070_v7  ;;  %vm1078_vm12 = vcmp.gt.f32.partialorder %v1070_v7, 0.0 }
 0x2e9   :  { %1624 = vmatpush1.bf16.msra.mxu0 %v1448_v12  ;;  %1788 = vmatpush1.bf16.msra.mxu1 %v1450_v14  ;;  %v1484_v12 = vunpack.c.h.s8.bf16 %v1228_v6  ;;  %v1486_v14 = vunpack.c.h.s8.bf16 %v1230_v4 }
 0x2ea   :  { %1625 = vmatprep.subr.bf16.mxu0 %v1453_v15  ;;  %1789 = vmatprep.subr.bf16.mxu1 %v1455_v16  ;;  %v1094_v15 = vsel %vm1078_vm12, %v1070_v7, %v1086_v11 }
 0x2eb   :  { %v1102_v16 = vpack.c.bf16 %v1094_v15, %v1094_v15 }
 0x2ed   :  { %1626 = vmatpush1.bf16.msra.mxu0 %v1452_v20  ;;  %1790 = vmatpush1.bf16.msra.mxu1 %v1454_v61  ;;  %v1821_v20 = vrot.slane %v1816_v17, %v2184_v49  ;;  %v1829_v61 = vrot.slane %v1816_v17, %v2215_v31 }
 0x2ee   :  { %1627 = vmatprep.subr.bf16.mxu0 %v1457_v21  ;;  %1791 = vmatprep.subr.bf16.mxu1 %v1459_v22  ;;  %v1825_v21 = vrot.slane %v1816_v17, %v2189_v51  ;;  %v1833_v22 = vrot.slane %v1816_v17, %v2194_v53 }
 0x2f1   :  { %1628 = vmatpush1.bf16.msra.mxu0 %v1456_v24  ;;  %1792 = vmatpush1.bf16.msra.mxu1 %v1458_v25 }
 0x2f2   :  { %1629 = vmatprep.subr.bf16.mxu0 %v1461_v26  ;;  %1793 = vmatprep.subr.bf16.mxu1 %v1463_v27  ;;  %v1851_v26 = vrot.slane %v1842_v18, %v2189_v51  ;;  %v1859_v27 = vrot.slane %v1842_v18, %v2194_v53 }
 0x2f5   :  { %1630 = vmatpush1.bf16.msra.mxu0 %v1460_v30  ;;  %1794 = vmatpush1.bf16.msra.mxu1 %v1462_v32 }
 0x2f6   :  { %1631 = vmatprep.subr.bf16.mxu0 %v1465_v33  ;;  %1795 = vmatprep.subr.bf16.mxu1 %v1467_v34 }
 0x2f9   :  { %1632 = vmatpush1.bf16.msra.mxu0 %v1464_v37  ;;  %1796 = vmatpush1.bf16.msra.mxu1 %v1466_v38 }
 0x2fa   :  { %1633 = vmatprep.subr.bf16.mxu0 %v1469_v39  ;;  %1797 = vmatprep.subr.bf16.mxu1 %v1471_v40 }
 0x2fd   :  { %1634 = vmatpush1.bf16.msra.mxu0 %v1468_v43  ;;  %1798 = vmatpush1.bf16.msra.mxu1 %v1470_v44 }
 0x2fe   :  { %1635 = vmatprep.subr.bf16.mxu0 %v1473_v45  ;;  %1799 = vmatprep.subr.bf16.mxu1 %v1475_v46 }
 0x301   :  { %1636 = vmatpush1.bf16.msra.mxu0 %v1472_v48  ;;  %1800 = vmatpush1.bf16.msra.mxu1 %v1474_v55 }
 0x302   :  { %1637 = vmatprep.subr.bf16.mxu0 %v1477_v56  ;;  %1801 = vmatprep.subr.bf16.mxu1 %v1479_v57 }
 0x305   :  { %1638 = vmatpush1.bf16.msra.mxu0 %v1476_v2  ;;  %1802 = vmatpush1.bf16.msra.mxu1 %v1478_v3 }
 0x306   :  { %1639 = vmatprep.subr.bf16.mxu0 %v1481_v19  ;;  %1803 = vmatprep.subr.bf16.mxu1 %v1483_v5 }
 0x309   :  { %1640 = vmatpush1.bf16.msra.mxu0 %v1480_v63  ;;  %1804 = vmatpush1.bf16.msra.mxu1 %v1482_v8 }
 0x30a   :  { %1641 = vmatprep.subr.bf16.mxu0 %v1485_v13  ;;  %1805 = vmatprep.subr.bf16.mxu1 %v1487_v9 }
 0x30d   :  { %1642 = vmatpush1.bf16.msra.mxu0 %v1484_v12  ;;  %1806 = vmatpush1.bf16.msra.mxu1 %v1486_v14 }
 0x310   :  { %1644 = vmatmul.mubr.bf16.vlgmr.msra.gmra.mrb[12].mxu0 %v1102_v16  ;;  %1808 = vmatmul.mubr.bf16.vlgmr.msra.gmra.mrb[12].mxu1 %v1102_v16 }
 0x3e3   :  { %v1645_v24 = vpop.f32.mrb[12].mxu0  ;;  %v1809_v25 = vpop.f32.mrb[12].mxu1 }
 0x3e4   :  { %v1838_v28 = vmul.f32 %v1821_v20, %v1645_v24  ;;  %v1840_v29 = vmul.f32 %v1829_v61, %v1809_v25  ;;  %v1647_v30 = vpop.f32.mrb[13].mxu0  ;;  %v1811_v32 = vpop.f32.mrb[13].mxu1 }
 0x3e5   :  { %v1839_v33 = vmul.f32 %v1825_v21, %v1647_v30  ;;  %v1841_v34 = vmul.f32 %v1833_v22, %v1811_v32  ;;  %v1649_v35 = vpop.f32.mrb[14].mxu0  ;;  %v1813_v36 = vpop.f32.mrb[14].mxu1 }
 0x3e6   :  { %v1864_v37 = vadd.f32 %v1847_v10, %v1838_v28  ;;  %v1866_v38 = vadd.f32 %v1855_v23, %v1840_v29  ;;  %v1650_v39 = vpop.f32.mrb[15].mxu0  ;;  %v1814_v49 = vpop.f32.mrb[15].mxu1 }
 0x3e7   :  { %v1865_v40 = vadd.f32 %v1851_v26, %v1839_v33  ;;  %v1867_v31 = vadd.f32 %v1859_v27, %v1841_v34 }
 0x3e8   :  { %1956 = vtanh.f32 %v1864_v37 }
 0x3e9   :  { %1958 = vtanh.f32 %v1866_v38 }
 0x3ea   :  { %1960 = vtanh.f32 %v1865_v40 }
 0x3eb   :  { %1962 = vtanh.f32 %v1867_v31 }
 0x3f2   :  { %v1957_v51 = vpop.eup %1956 }
 0x3f3   :  { %v1959_v53 = vpop.eup %1958  ;;  %1872 = vst [vmem:[%s2323_s9] sm:$0xff] %v1957_v51 }
 0x3f4   :  { %v1961_v1 = vpop.eup %1960  ;;  %1874 = vst [vmem:[%s2323_s9 + $0x10] sm:$0xff] %v1959_v53 }
 0x3f5   :  { %v1963_v41 = vpop.eup %1962  ;;  %1873 = vst [vmem:[%s2323_s9 + $0x8] sm:$0xff] %v1961_v1 }
 0x3f6   :  { %1875 = vst [vmem:[%s2323_s9 + $0x18] sm:$0xff] %v1963_v41 }
 0x3f7   :  { %1880 = vsyncpa [#allocation3], 1 }
 0x3f8   :  { %1881 = vsyncpa [#allocation5], 1 }
 0x3f9   :  { %1882 = vsyncpa [#allocation8], 1 }

</bundles_post_ra>
